<compile_context>
chip_gen: v7x
topology: tpu7x:2x2x1
jax: 0.10.0
libtpu: 0.0.40
codegen_flags: <defaults>
</compile_context>

<pallas_src>
import math
import functools

import jax
import jax.numpy as jnp
from jax import lax
from jax.experimental import pallas as pl
from jax.experimental.pallas import tpu as pltpu


# ---------------------------------------------------------------------------
# Helpers
# ---------------------------------------------------------------------------

def _layer_norm(y, g, b, eps=1e-5):
    mu = jnp.mean(y, axis=-1, keepdims=True)
    var = jnp.mean((y - mu) ** 2, axis=-1, keepdims=True)
    return (y - mu) * lax.rsqrt(var + eps) * g + b


def _pick_batch_tile(B, S, H, vmem_budget=24 * 2 ** 20):
    """Pick a batch tile (divisor of B).  Tiles < B must be multiples of 8 so
    the (B_tile, H) / (B_tile*S, ...) block shapes satisfy the (8,128) rule."""
    def footprint(bt):
        rows = bt * S
        return rows * H * 4 * 8 + bt * S * S * 4 * 3   # activations + per-head scores

    cands = sorted({d for d in range(8, B + 1, 8) if B % d == 0} | {B})
    for d in cands:                                     # prefer M = bt*S >= 256
        if footprint(d) <= vmem_budget and d * S >= 256:
            return d
    fitting = [d for d in cands if footprint(d) <= vmem_budget]
    return max(fitting) if fitting else min(cands)


# ---------------------------------------------------------------------------
# Fused transformer-block kernel (embedding input -> states_hidden)
# ---------------------------------------------------------------------------

def sasrec_block_kernel(num_heads, b_tile, seq_len,
                        # VMEM inputs
                        aux_ref, seq0_ref, cb_ref, w_ref, v_ref,
                        # output
                        states_ref,
                        # scratch
                        seq_sc, attn_sc):
    l = pl.program_id(1)                       # transformer-block index (inner axis)
    BT, S = b_tile, seq_len
    BS, H = seq0_ref.shape
    nh = num_heads
    hd = H // nh

    m = aux_ref[:, 0:1]                        # (BS, 1) padding mask

    # ---- first block step for this batch tile: init carried sequence --------
    @pl.when(l == 0)
    def _init():
        seq_sc[...] = seq0_ref[...] * m        # embed+PE already added in glue

    x = seq_sc[...]                            # (BS, H) f32
    xb = x.astype(jnp.bfloat16)

    vv = v_ref[0]                              # (10, H) f32 biases / LN params
    bias = cb_ref[...]                         # (S, S) additive causal bias

    # ---- Q/K/V projections (bf16 MXU operands, f32 accumulation) ------------
    # 1/sqrt(hd) is already folded into Wq (w_ref[0, 0]) at init time.
    q = (jnp.dot(xb, w_ref[0, 0], preferred_element_type=jnp.float32)
         + vv[0:1, :]).reshape(BT, S, H)
    k = (jnp.dot(xb, w_ref[0, 1], preferred_element_type=jnp.float32)
         + vv[1:2, :]).reshape(BT, S, H)
    v = (jnp.dot(xb, w_ref[0, 2], preferred_element_type=jnp.float32)
         + vv[2:3, :]).reshape(BT, S, H)

    # ---- multi-head self-attention; each head writes its lane slice of one
    # (BS, H) buffer, then Wo is applied as a single K=H matmul ----------------
    for h in range(nh):                        # num_heads is small & static
        sl = slice(h * hd, (h + 1) * hd)
        qh = q[:, :, sl].astype(jnp.bfloat16)
        kh = k[:, :, sl].astype(jnp.bfloat16)
        vh = v[:, :, sl].astype(jnp.bfloat16)
        s = jnp.einsum('bqd,bkd->bqk', qh, kh,
                       preferred_element_type=jnp.float32)       # (BT, S, S) f32
        s = s + bias[None, :, :]
        s = s - jnp.max(s, axis=-1, keepdims=True)
        p = jnp.exp(s)
        p = p * pl.reciprocal(jnp.sum(p, axis=-1, keepdims=True), approx=True)
        ho = jnp.einsum('bqk,bkd->bqd', p.astype(jnp.bfloat16), vh,
                        preferred_element_type=jnp.float32)       # (BT, S, hd)
        attn_sc[:, sl] = ho.reshape(BS, hd)

    attn = (jnp.dot(attn_sc[...].astype(jnp.bfloat16), w_ref[0, 3],
                    preferred_element_type=jnp.float32) + vv[3:4, :])

    # ---- residual + LayerNorm 1 ----------------------------------------------
    x1 = _layer_norm(x + attn, vv[6:7, :], vv[7:8, :])

    # ---- feed forward (Linear -> ReLU -> Linear) -----------------------------
    ff = jnp.maximum(
        jnp.dot(x1.astype(jnp.bfloat16), w_ref[0, 4],
                preferred_element_type=jnp.float32) + vv[4:5, :], 0.0)
    ff = (jnp.dot(ff.astype(jnp.bfloat16), w_ref[0, 5],
                  preferred_element_type=jnp.float32) + vv[5:6, :])

    # ---- residual + LayerNorm 2 + SASRec sequence mask, carried in scratch ---
    x2 = _layer_norm(x1 + ff, vv[8:9, :], vv[9:10, :])
    seq_sc[...] = x2 * m

    # ---- last block step: states_hidden = seq[b, len_state[b]-1] (vectorized
    # select-and-reduce via the precomputed one-hot selector column) -----------
    @pl.when(l == pl.num_programs(1) - 1)
    def _final():
        sel = aux_ref[:, 1:2]                                     # (BS, 1) one-hot
        states_ref[...] = jnp.sum((seq_sc[...] * sel).reshape(BT, S, H), axis=1)


# ---------------------------------------------------------------------------
# Output-heads kernel (states_hidden -> [q_values | ce_logits]), tiled over 2N
# ---------------------------------------------------------------------------

def head_kernel(states_ref, w_ref, b_ref, out_ref):
    out_ref[...] = (jnp.dot(states_ref[...].astype(jnp.bfloat16), w_ref[...],
                            preferred_element_type=jnp.float32) + b_ref[...])


# ---------------------------------------------------------------------------
# Forward wrapper
# ---------------------------------------------------------------------------

@functools.partial(jax.jit, static_argnums=(3, 4))
def sasrec_forward(params, inputs, len_state, item_num, num_heads):
    B, S = inputs.shape
    H = params["item_embeddings"].shape[1]
    num_blocks = params["w_blk"].shape[0]
    two_n = params["w_heads"].shape[1]
    N = two_n // 2

    # ---- XLA glue: embedding gather + PE, padding mask, last-state selector --
    mask = (inputs != item_num).astype(jnp.float32)                    # (B, S)
    pos = len_state.astype(jnp.int32) - 1
    pos = jnp.where(pos < 0, pos + S, pos)                             # torch wrap
    sel = (jnp.arange(S, dtype=jnp.int32)[None, :] == pos[:, None]).astype(jnp.float32)
    aux = jnp.stack([mask, sel], axis=-1).reshape(B * S, 2)            # (B*S, 2)
    seq0 = (params["item_embeddings"][inputs] + params["pe"][:S]).reshape(B * S, H)
    causal = jnp.where(jnp.arange(S)[:, None] >= jnp.arange(S)[None, :],
                       0.0, -1e30).astype(jnp.float32)                 # (S, S)

    BT = _pick_batch_tile(B, S, H)
    n_bt = B // BT

    kern = functools.partial(sasrec_block_kernel, num_heads, BT, S)
    states = pl.pallas_call(
        kern,
        out_shape=jax.ShapeDtypeStruct((B, H), jnp.float32),
        grid_spec=pltpu.PrefetchScalarGridSpec(
            num_scalar_prefetch=0,
            grid=(n_bt, num_blocks),
            in_specs=[
                pl.BlockSpec((BT * S, 2), lambda bt, l: (bt, 0)),        # mask|sel
                pl.BlockSpec((BT * S, H), lambda bt, l: (bt, 0)),        # embed+PE
                pl.BlockSpec((S, S), lambda bt, l: (0, 0)),              # causal bias
                pl.BlockSpec((1, 6, H, H), lambda bt, l: (l, 0, 0, 0)),  # Wq..W2 bf16
                pl.BlockSpec((1, 10, H), lambda bt, l: (l, 0, 0)),       # biases + LN
            ],
            out_specs=pl.BlockSpec((BT, H), lambda bt, l: (bt, 0)),
            scratch_shapes=[pltpu.VMEM((BT * S, H), jnp.float32),        # carried seq
                            pltpu.VMEM((BT * S, H), jnp.float32)],       # head concat
        ),
        compiler_params=pltpu.CompilerParams(
            dimension_semantics=("parallel", "arbitrary"),
            vmem_limit_bytes=64 * 1024 * 1024),
    )(aux, seq0, causal, params["w_blk"], params["v_blk"])

    # ---- output heads as a separate tiny kernel, tiled over the 2N logits ----
    tn = two_n
    for cand in (512, 256, 128):
        if two_n % cand == 0:
            tn = cand
            break
    out = pl.pallas_call(
        head_kernel,
        out_shape=jax.ShapeDtypeStruct((B, two_n), jnp.float32),
        grid_spec=pltpu.PrefetchScalarGridSpec(
            num_scalar_prefetch=0,
            grid=(two_n // tn,),
            in_specs=[
                pl.BlockSpec((B, H), lambda j: (0, 0)),
                pl.BlockSpec((H, tn), lambda j: (0, j)),
                pl.BlockSpec((1, tn), lambda j: (0, j)),
            ],
            out_specs=pl.BlockSpec((B, tn), lambda j: (0, j)),
        ),
        compiler_params=pltpu.CompilerParams(dimension_semantics=("parallel",)),
    )(states, params["w_heads"], params["b_heads"])

    q_values = out[:, :N]
    ce_logits = out[:, N:]
    return q_values, ce_logits


# ---------------------------------------------------------------------------
# Parameter construction (deterministic, in-script)
# ---------------------------------------------------------------------------

def make_positional_encoding(d_model, max_len):
    position = jnp.arange(max_len, dtype=jnp.float32)[:, None]
    div_term = jnp.exp(jnp.arange(0, d_model, 2, dtype=jnp.float32)
                       * (-math.log(10000.0) / d_model))
    pe = jnp.zeros((max_len, d_model), jnp.float32)
    pe = pe.at[:, 0::2].set(jnp.sin(position * div_term))
    pe = pe.at[:, 1::2].set(jnp.cos(position * div_term))
    return pe


def init_params(key, item_num, hidden_size, state_size, num_blocks, num_heads):
    H = hidden_size
    hd = H // num_heads
    scale = 1.0 / math.sqrt(hd)

    def nrm(k, shape, s=0.02):
        return s * jax.random.normal(k, shape, jnp.float32)

    ks = jax.random.split(key, 9)
    # All weights pre-transposed to (in, out).  The 1/sqrt(hd) attention scale
    # is folded into Wq (and would be folded into bq; bq is zero at init).
    wq = nrm(ks[1], (num_blocks, H, H)) * scale
    wk = nrm(ks[2], (num_blocks, H, H))
    wv = nrm(ks[3], (num_blocks, H, H))
    wo = nrm(ks[4], (num_blocks, H, H))
    w1 = nrm(ks[5], (num_blocks, H, H))
    w2 = nrm(ks[6], (num_blocks, H, H))
    w_blk = jnp.stack([wq, wk, wv, wo, w1, w2], axis=1).astype(jnp.bfloat16)

    zeros_h = jnp.zeros((num_blocks, H), jnp.float32)
    ones_h = jnp.ones((num_blocks, H), jnp.float32)
    # [bq, bk, bv, bo, b1, b2, g1, be1, g2, be2]
    v_blk = jnp.stack([zeros_h] * 6 + [ones_h, zeros_h, ones_h, zeros_h], axis=1)

    params = {
        "item_embeddings": nrm(ks[0], (item_num + 1, H)),
        "pe": make_positional_encoding(H, state_size),
        "w_blk": w_blk,                                            # (nb, 6, H, H) bf16
        "v_blk": v_blk,                                            # (nb, 10, H)   f32
        # fused output heads: [output1 | output2]
        "w_heads": jnp.concatenate([nrm(ks[7], (H, item_num)),
                                    nrm(ks[8], (H, item_num))],
                                   axis=1).astype(jnp.bfloat16),   # (H, 2N) bf16
        "b_heads": jnp.zeros((1, 2 * item_num), jnp.float32),
    }
    return params


# ---------------------------------------------------------------------------
# Demo
# ---------------------------------------------------------------------------

if __name__ == "__main__":
    item_num = 64
    hidden_size = 32
    state_size = 8          # sequence length
    num_blocks = 2
    num_heads = 2
    batch = 2
    assert hidden_size % num_heads == 0

    key = jax.random.PRNGKey(0)
    k_inp, k_par = jax.random.split(key)

    inputs = jax.random.randint(k_inp, (batch, state_size), 0, item_num + 1,
                                dtype=jnp.int32)
    inputs = inputs.at[1, 5:].set(item_num)                  # padding tokens
    len_state = jnp.array([state_size, 5], dtype=jnp.int32)

    params = init_params(k_par, item_num, hidden_size, state_size,
                         num_blocks, num_heads)

    q_values, ce_logits = sasrec_forward(params, inputs, len_state,
                                         item_num, num_heads)
    jax.block_until_ready(q_values)
    jax.block_until_ready(ce_logits)

    assert q_values.shape == (batch, item_num)
    assert ce_logits.shape == (batch, item_num)
    assert bool(jnp.all(jnp.isfinite(q_values)))
    assert bool(jnp.all(jnp.isfinite(ce_logits)))
    print("KERNEL_OK")
</pallas_src>

<mosaic_0001>
module attributes {stable_mosaic.version = 11 : i64} {
  func.func @head_kernel(%arg0: i32, %arg1: memref<2x32xf32, #tpu.memory_space<vmem>>, %arg2: memref<32x128xbf16, #tpu.memory_space<vmem>>, %arg3: memref<1x128xf32, #tpu.memory_space<vmem>>, %arg4: memref<2x128xf32, #tpu.memory_space<vmem>>) attributes {dimension_semantics = [#tpu.dimension_semantics<parallel>], iteration_bounds = array<i64: 1>, scalar_prefetch = 0 : i64, scratch_operands = 0 : i64, tpu.core_type = #tpu.core_type<tc>, window_params = [{pipeline_mode = #tpu.pipeline_mode<synchronous>, transform_indices = @transform_0, window_bounds = array<i64: 2, 32>}, {transform_indices = @transform_1, window_bounds = array<i64: 32, 128>}, {transform_indices = @transform_2, window_bounds = array<i64: 1, 128>}, {transform_indices = @transform_3, window_bounds = array<i64: 2, 128>}]} {
    %c0 = arith.constant 0 : index
    %c0_0 = arith.constant 0 : index
    %0 = vector.load %arg1[%c0, %c0_0] : memref<2x32xf32, #tpu.memory_space<vmem>>, vector<2x32xf32>
    %1 = arith.truncf %0 : vector<2x32xf32> to vector<2x32xbf16>
    %c0_1 = arith.constant 0 : index
    %c0_2 = arith.constant 0 : index
    %2 = vector.load %arg2[%c0_1, %c0_2] : memref<32x128xbf16, #tpu.memory_space<vmem>>, vector<32x128xbf16>
    %cst = arith.constant dense<0.000000e+00> : vector<2x128xf32>
    %3 = tpu.matmul %1, %2, %cst {dimension_numbers = #tpu.dot_dimension_numbers<[1], [0], [0], [1], [0, 0, 1, 1], [], []>} : vector<2x32xbf16>, vector<32x128xbf16>, vector<2x128xf32> -> vector<2x128xf32>
    %c0_3 = arith.constant 0 : index
    %c0_4 = arith.constant 0 : index
    %4 = vector.load %arg3[%c0_3, %c0_4] : memref<1x128xf32, #tpu.memory_space<vmem>>, vector<1x128xf32>
    %5 = vector.broadcast %4 : vector<1x128xf32> to vector<2x128xf32>
    %6 = arith.addf %3, %5 : vector<2x128xf32>
    %c0_5 = arith.constant 0 : index
    %c0_6 = arith.constant 0 : index
    %7 = vector.load %arg4[%c0_5, %c0_6] : memref<2x128xf32, #tpu.memory_space<vmem>>, vector<2x128xf32>
    tpu.vector_store %arg4[%c0_5, %c0_6], %6 {strides = array<i32>} : memref<2x128xf32, #tpu.memory_space<vmem>>, vector<2x128xf32>,
    return
  }
  func.func @transform_0(%arg0: i32) -> (i32, i32) {
    %c0_i32 = arith.constant 0 : i32
    %c0_i32_0 = arith.constant 0 : i32
    %c0_i32_1 = arith.constant 0 : i32
    return %c0_i32, %c0_i32_0 : i32, i32
  }
  func.func @transform_1(%arg0: i32) -> (i32, i32) {
    %c0_i32 = arith.constant 0 : i32
    %c0_i32_0 = arith.constant 0 : i32
    return %c0_i32, %arg0 : i32, i32
  }
  func.func @transform_2(%arg0: i32) -> (i32, i32) {
    %c0_i32 = arith.constant 0 : i32
    %c0_i32_0 = arith.constant 0 : i32
    return %c0_i32, %arg0 : i32, i32
  }
  func.func @transform_3(%arg0: i32) -> (i32, i32) {
    %c0_i32 = arith.constant 0 : i32
    %c0_i32_0 = arith.constant 0 : i32
    return %c0_i32, %arg0 : i32, i32
  }
}

module attributes {stable_mosaic.version = 11 : i64} {
  func.func @sasrec_block_kernel(%arg0: i32, %arg1: i32, %arg2: memref<16x2xf32, #tpu.memory_space<vmem>>, %arg3: memref<16x32xf32, #tpu.memory_space<vmem>>, %arg4: memref<8x8xf32, #tpu.memory_space<vmem>>, %arg5: memref<1x6x32x32xbf16, #tpu.memory_space<vmem>>, %arg6: memref<1x10x32xf32, #tpu.memory_space<vmem>>, %arg7: memref<2x32xf32, #tpu.memory_space<vmem>>, %arg8: memref<16x32xf32, #tpu.memory_space<vmem>>, %arg9: memref<16x32xf32, #tpu.memory_space<vmem>>) attributes {dimension_semantics = [#tpu.dimension_semantics<parallel>, #tpu.dimension_semantics<arbitrary>], iteration_bounds = array<i64: 1, 2>, scalar_prefetch = 0 : i64, scratch_operands = 2 : i64, tpu.core_type = #tpu.core_type<tc>, window_params = [{transform_indices = @transform_0, window_bounds = array<i64: 16, 2>}, {transform_indices = @transform_1, window_bounds = array<i64: 16, 32>}, {pipeline_mode = #tpu.pipeline_mode<synchronous>, transform_indices = @transform_2, window_bounds = array<i64: 8, 8>}, {transform_indices = @transform_3, window_bounds = array<i64: 1, 6, 32, 32>}, {transform_indices = @transform_4, window_bounds = array<i64: 1, 10, 32>}, {transform_indices = @transform_5, window_bounds = array<i64: 2, 32>}]} {
    %c0 = arith.constant 0 : index
    %c0_0 = arith.constant 0 : index
    %0 = vector.load %arg2[%c0, %c0_0] : memref<16x2xf32, #tpu.memory_space<vmem>>, vector<16x1xf32>
    %c0_i32 = arith.constant 0 : i32
    %1 = arith.cmpi eq, %arg1, %c0_i32 : i32
    %2 = arith.extui %1 : i1 to i32
    %c0_i32_1 = arith.constant 0 : i32
    %3 = arith.cmpi ne, %2, %c0_i32_1 : i32
    scf.if %3 {
      %c0_60 = arith.constant 0 : index
      %c0_61 = arith.constant 0 : index
      %158 = vector.load %arg3[%c0_60, %c0_61] : memref<16x32xf32, #tpu.memory_space<vmem>>, vector<16x32xf32>
      %159 = vector.broadcast %0 : vector<16x1xf32> to vector<16x32xf32>
      %160 = arith.mulf %158, %159 : vector<16x32xf32>
      %c0_62 = arith.constant 0 : index
      %c0_63 = arith.constant 0 : index
      %161 = vector.load %arg8[%c0_62, %c0_63] : memref<16x32xf32, #tpu.memory_space<vmem>>, vector<16x32xf32>
      tpu.vector_store %arg8[%c0_62, %c0_63], %160 {strides = array<i32>} : memref<16x32xf32, #tpu.memory_space<vmem>>, vector<16x32xf32>,
    } else {
    }
    %c0_2 = arith.constant 0 : index
    %c0_3 = arith.constant 0 : index
    %4 = vector.load %arg8[%c0_2, %c0_3] : memref<16x32xf32, #tpu.memory_space<vmem>>, vector<16x32xf32>
    %5 = arith.truncf %4 : vector<16x32xf32> to vector<16x32xbf16>
    %c0_4 = arith.constant 0 : index
    %c0_5 = arith.constant 0 : index
    %c0_6 = arith.constant 0 : index
    %6 = vector.load %arg6[%c0_4, %c0_5, %c0_6] : memref<1x10x32xf32, #tpu.memory_space<vmem>>, vector<1x10x32xf32>
    %7 = vector.shape_cast %6 : vector<1x10x32xf32> to vector<10x32xf32>
    %c0_7 = arith.constant 0 : index
    %c0_8 = arith.constant 0 : index
    %8 = vector.load %arg4[%c0_7, %c0_8] : memref<8x8xf32, #tpu.memory_space<vmem>>, vector<8x8xf32>
    %c0_9 = arith.constant 0 : index
    %c0_10 = arith.constant 0 : index
    %c0_11 = arith.constant 0 : index
    %c0_12 = arith.constant 0 : index
    %9 = vector.load %arg5[%c0_9, %c0_10, %c0_11, %c0_12] : memref<1x6x32x32xbf16, #tpu.memory_space<vmem>>, vector<1x1x32x32xbf16>
    %10 = vector.shape_cast %9 : vector<1x1x32x32xbf16> to vector<32x32xbf16>
    %cst = arith.constant dense<0.000000e+00> : vector<16x32xf32>
    %11 = tpu.matmul %5, %10, %cst {dimension_numbers = #tpu.dot_dimension_numbers<[1], [0], [0], [1], [0, 0, 1, 1], [], []>} : vector<16x32xbf16>, vector<32x32xbf16>, vector<16x32xf32> -> vector<16x32xf32>
    %12 = vector.extract_strided_slice %7 {offsets = [0, 0], sizes = [1, 32], strides = [1, 1]} : vector<10x32xf32> to vector<1x32xf32>
    %13 = vector.broadcast %12 : vector<1x32xf32> to vector<16x32xf32>
    %14 = arith.addf %11, %13 : vector<16x32xf32>
    %15 = vector.shape_cast %14 : vector<16x32xf32> to vector<2x8x32xf32>
    %c0_13 = arith.constant 0 : index
    %c1 = arith.constant 1 : index
    %c0_14 = arith.constant 0 : index
    %c0_15 = arith.constant 0 : index
    %16 = vector.load %arg5[%c0_13, %c1, %c0_14, %c0_15] : memref<1x6x32x32xbf16, #tpu.memory_space<vmem>>, vector<1x1x32x32xbf16>
    %17 = vector.shape_cast %16 : vector<1x1x32x32xbf16> to vector<32x32xbf16>
    %cst_16 = arith.constant dense<0.000000e+00> : vector<16x32xf32>
    %18 = tpu.matmul %5, %17, %cst_16 {dimension_numbers = #tpu.dot_dimension_numbers<[1], [0], [0], [1], [0, 0, 1, 1], [], []>} : vector<16x32xbf16>, vector<32x32xbf16>, vector<16x32xf32> -> vector<16x32xf32>
    %19 = vector.extract_strided_slice %7 {offsets = [1, 0], sizes = [1, 32], strides = [1, 1]} : vector<10x32xf32> to vector<1x32xf32>
    %20 = vector.broadcast %19 : vector<1x32xf32> to vector<16x32xf32>
    %21 = arith.addf %18, %20 : vector<16x32xf32>
    %22 = vector.shape_cast %21 : vector<16x32xf32> to vector<2x8x32xf32>
    %c0_17 = arith.constant 0 : index
    %c2 = arith.constant 2 : index
    %c0_18 = arith.constant 0 : index
    %c0_19 = arith.constant 0 : index
    %23 = vector.load %arg5[%c0_17, %c2, %c0_18, %c0_19] : memref<1x6x32x32xbf16, #tpu.memory_space<vmem>>, vector<1x1x32x32xbf16>
    %24 = vector.shape_cast %23 : vector<1x1x32x32xbf16> to vector<32x32xbf16>
    %cst_20 = arith.constant dense<0.000000e+00> : vector<16x32xf32>
    %25 = tpu.matmul %5, %24, %cst_20 {dimension_numbers = #tpu.dot_dimension_numbers<[1], [0], [0], [1], [0, 0, 1, 1], [], []>} : vector<16x32xbf16>, vector<32x32xbf16>, vector<16x32xf32> -> vector<16x32xf32>
    %26 = vector.extract_strided_slice %7 {offsets = [2, 0], sizes = [1, 32], strides = [1, 1]} : vector<10x32xf32> to vector<1x32xf32>
    %27 = vector.broadcast %26 : vector<1x32xf32> to vector<16x32xf32>
    %28 = arith.addf %25, %27 : vector<16x32xf32>
    %29 = vector.shape_cast %28 : vector<16x32xf32> to vector<2x8x32xf32>
    %30 = vector.extract_strided_slice %15 {offsets = [0, 0, 0], sizes = [2, 8, 16], strides = [1, 1, 1]} : vector<2x8x32xf32> to vector<2x8x16xf32>
    %31 = arith.truncf %30 : vector<2x8x16xf32> to vector<2x8x16xbf16>
    %32 = vector.extract_strided_slice %22 {offsets = [0, 0, 0], sizes = [2, 8, 16], strides = [1, 1, 1]} : vector<2x8x32xf32> to vector<2x8x16xf32>
    %33 = arith.truncf %32 : vector<2x8x16xf32> to vector<2x8x16xbf16>
    %34 = vector.extract_strided_slice %29 {offsets = [0, 0, 0], sizes = [2, 8, 16], strides = [1, 1, 1]} : vector<2x8x32xf32> to vector<2x8x16xf32>
    %35 = arith.truncf %34 : vector<2x8x16xf32> to vector<2x8x16xbf16>
    "tpu.trace_start"() <{level = 10 : i32, message = "bqd,bkd->bqk"}> : () -> ()
    %cst_21 = arith.constant dense<0.000000e+00> : vector<2x8x8xf32>
    %36 = tpu.matmul %31, %33, %cst_21 {dimension_numbers = #tpu.dot_dimension_numbers<[2], [2], [1], [1], [0, 0, 0, 1, 1, 1], [0], [0]>} : vector<2x8x16xbf16>, vector<2x8x16xbf16>, vector<2x8x8xf32> -> vector<2x8x8xf32>
    "tpu.trace_stop"() : () -> ()
    %37 = vector.shape_cast %8 : vector<8x8xf32> to vector<1x8x8xf32>
    %38 = vector.broadcast %37 : vector<1x8x8xf32> to vector<2x8x8xf32>
    %39 = arith.addf %36, %38 : vector<2x8x8xf32>
    %cst_22 = arith.constant dense<0xFF800000> : vector<2x8xf32>
    %40 = vector.multi_reduction <maximumf>, %39, %cst_22 [2] : vector<2x8x8xf32> to vector<2x8xf32>
    %41 = vector.shape_cast %40 : vector<2x8xf32> to vector<2x8x1xf32>
    %42 = vector.broadcast %41 : vector<2x8x1xf32> to vector<2x8x8xf32>
    %43 = arith.subf %39, %42 : vector<2x8x8xf32>
    %44 = math.exp %43 : vector<2x8x8xf32>
    %cst_23 = arith.constant dense<0.000000e+00> : vector<2x8xf32>
    %45 = vector.multi_reduction <add>, %44, %cst_23 [2] : vector<2x8x8xf32> to vector<2x8xf32>
    %46 = vector.shape_cast %45 : vector<2x8xf32> to vector<2x8x1xf32>
    %47 = tpu.reciprocal %46 {approx = true} : vector<2x8x1xf32> -> vector<2x8x1xf32>
    %48 = vector.broadcast %47 : vector<2x8x1xf32> to vector<2x8x8xf32>
    %49 = arith.mulf %44, %48 : vector<2x8x8xf32>
    %50 = arith.truncf %49 : vector<2x8x8xf32> to vector<2x8x8xbf16>
    "tpu.trace_start"() <{level = 10 : i32, message = "bqk,bkd->bqd"}> : () -> ()
    %cst_24 = arith.constant dense<0.000000e+00> : vector<2x8x16xf32>
    %51 = tpu.matmul %50, %35, %cst_24 {dimension_numbers = #tpu.dot_dimension_numbers<[2], [1], [1], [2], [0, 0, 0, 1, 1, 2], [0], [0]>} : vector<2x8x8xbf16>, vector<2x8x16xbf16>, vector<2x8x16xf32> -> vector<2x8x16xf32>
    "tpu.trace_stop"() : () -> ()
    %52 = vector.shape_cast %51 : vector<2x8x16xf32> to vector<16x16xf32>
    %c0_25 = arith.constant 0 : index
    %c0_26 = arith.constant 0 : index
    %53 = vector.load %arg9[%c0_25, %c0_26] : memref<16x32xf32, #tpu.memory_space<vmem>>, vector<16x16xf32>
    tpu.vector_store %arg9[%c0_25, %c0_26], %52 {strides = array<i32>} : memref<16x32xf32, #tpu.memory_space<vmem>>, vector<16x16xf32>,
    %54 = vector.extract_strided_slice %15 {offsets = [0, 0, 16], sizes = [2, 8, 16], strides = [1, 1, 1]} : vector<2x8x32xf32> to vector<2x8x16xf32>
    %55 = arith.truncf %54 : vector<2x8x16xf32> to vector<2x8x16xbf16>
    %56 = vector.extract_strided_slice %22 {offsets = [0, 0, 16], sizes = [2, 8, 16], strides = [1, 1, 1]} : vector<2x8x32xf32> to vector<2x8x16xf32>
    %57 = arith.truncf %56 : vector<2x8x16xf32> to vector<2x8x16xbf16>
    %58 = vector.extract_strided_slice %29 {offsets = [0, 0, 16], sizes = [2, 8, 16], strides = [1, 1, 1]} : vector<2x8x32xf32> to vector<2x8x16xf32>
    %59 = arith.truncf %58 : vector<2x8x16xf32> to vector<2x8x16xbf16>
    "tpu.trace_start"() <{level = 10 : i32, message = "bqd,bkd->bqk"}> : () -> ()
    %cst_27 = arith.constant dense<0.000000e+00> : vector<2x8x8xf32>
    %60 = tpu.matmul %55, %57, %cst_27 {dimension_numbers = #tpu.dot_dimension_numbers<[2], [2], [1], [1], [0, 0, 0, 1, 1, 1], [0], [0]>} : vector<2x8x16xbf16>, vector<2x8x16xbf16>, vector<2x8x8xf32> -> vector<2x8x8xf32>
    "tpu.trace_stop"() : () -> ()
    %61 = vector.shape_cast %8 : vector<8x8xf32> to vector<1x8x8xf32>
    %62 = vector.broadcast %61 : vector<1x8x8xf32> to vector<2x8x8xf32>
    %63 = arith.addf %60, %62 : vector<2x8x8xf32>
    %cst_28 = arith.constant dense<0xFF800000> : vector<2x8xf32>
    %64 = vector.multi_reduction <maximumf>, %63, %cst_28 [2] : vector<2x8x8xf32> to vector<2x8xf32>
    %65 = vector.shape_cast %64 : vector<2x8xf32> to vector<2x8x1xf32>
    %66 = vector.broadcast %65 : vector<2x8x1xf32> to vector<2x8x8xf32>
    %67 = arith.subf %63, %66 : vector<2x8x8xf32>
    %68 = math.exp %67 : vector<2x8x8xf32>
    %cst_29 = arith.constant dense<0.000000e+00> : vector<2x8xf32>
    %69 = vector.multi_reduction <add>, %68, %cst_29 [2] : vector<2x8x8xf32> to vector<2x8xf32>
    %70 = vector.shape_cast %69 : vector<2x8xf32> to vector<2x8x1xf32>
    %71 = tpu.reciprocal %70 {approx = true} : vector<2x8x1xf32> -> vector<2x8x1xf32>
    %72 = vector.broadcast %71 : vector<2x8x1xf32> to vector<2x8x8xf32>
    %73 = arith.mulf %68, %72 : vector<2x8x8xf32>
    %74 = arith.truncf %73 : vector<2x8x8xf32> to vector<2x8x8xbf16>
    "tpu.trace_start"() <{level = 10 : i32, message = "bqk,bkd->bqd"}> : () -> ()
    %cst_30 = arith.constant dense<0.000000e+00> : vector<2x8x16xf32>
    %75 = tpu.matmul %74, %59, %cst_30 {dimension_numbers = #tpu.dot_dimension_numbers<[2], [1], [1], [2], [0, 0, 0, 1, 1, 2], [0], [0]>} : vector<2x8x8xbf16>, vector<2x8x16xbf16>, vector<2x8x16xf32> -> vector<2x8x16xf32>
    "tpu.trace_stop"() : () -> ()
    %76 = vector.shape_cast %75 : vector<2x8x16xf32> to vector<16x16xf32>
    %c0_31 = arith.constant 0 : index
    %c16 = arith.constant 16 : index
    %77 = vector.load %arg9[%c0_31, %c16] : memref<16x32xf32, #tpu.memory_space<vmem>>, vector<16x16xf32>
    tpu.vector_store %arg9[%c0_31, %c16], %76 {strides = array<i32>} : memref<16x32xf32, #tpu.memory_space<vmem>>, vector<16x16xf32>,
    %c0_32 = arith.constant 0 : index
    %c0_33 = arith.constant 0 : index
    %78 = vector.load %arg9[%c0_32, %c0_33] : memref<16x32xf32, #tpu.memory_space<vmem>>, vector<16x32xf32>
    %79 = arith.truncf %78 : vector<16x32xf32> to vector<16x32xbf16>
    %c0_34 = arith.constant 0 : index
    %c3 = arith.constant 3 : index
    %c0_35 = arith.constant 0 : index
    %c0_36 = arith.constant 0 : index
    %80 = vector.load %arg5[%c0_34, %c3, %c0_35, %c0_36] : memref<1x6x32x32xbf16, #tpu.memory_space<vmem>>, vector<1x1x32x32xbf16>
    %81 = vector.shape_cast %80 : vector<1x1x32x32xbf16> to vector<32x32xbf16>
    %cst_37 = arith.constant dense<0.000000e+00> : vector<16x32xf32>
    %82 = tpu.matmul %79, %81, %cst_37 {dimension_numbers = #tpu.dot_dimension_numbers<[1], [0], [0], [1], [0, 0, 1, 1], [], []>} : vector<16x32xbf16>, vector<32x32xbf16>, vector<16x32xf32> -> vector<16x32xf32>
    %83 = vector.extract_strided_slice %7 {offsets = [3, 0], sizes = [1, 32], strides = [1, 1]} : vector<10x32xf32> to vector<1x32xf32>
    %84 = vector.broadcast %83 : vector<1x32xf32> to vector<16x32xf32>
    %85 = arith.addf %82, %84 : vector<16x32xf32>
    %86 = arith.addf %4, %85 : vector<16x32xf32>
    %87 = vector.extract_strided_slice %7 {offsets = [6, 0], sizes = [1, 32], strides = [1, 1]} : vector<10x32xf32> to vector<1x32xf32>
    %88 = vector.extract_strided_slice %7 {offsets = [7, 0], sizes = [1, 32], strides = [1, 1]} : vector<10x32xf32> to vector<1x32xf32>
    %cst_38 = arith.constant dense<0.000000e+00> : vector<16xf32>
    %89 = vector.multi_reduction <add>, %86, %cst_38 [1] : vector<16x32xf32> to vector<16xf32>
    %90 = vector.shape_cast %89 : vector<16xf32> to vector<16x1xf32>
    %cst_39 = arith.constant 3.200000e+01 : f32
    %91 = vector.broadcast %cst_39 : f32 to vector<16x1xf32>
    %92 = arith.divf %90, %91 : vector<16x1xf32>
    %93 = vector.broadcast %92 : vector<16x1xf32> to vector<16x32xf32>
    %94 = arith.subf %86, %93 : vector<16x32xf32>
    %95 = arith.mulf %94, %94 : vector<16x32xf32>
    %cst_40 = arith.constant dense<0.000000e+00> : vector<16xf32>
    %96 = vector.multi_reduction <add>, %95, %cst_40 [1] : vector<16x32xf32> to vector<16xf32>
    %97 = vector.shape_cast %96 : vector<16xf32> to vector<16x1xf32>
    %cst_41 = arith.constant 3.200000e+01 : f32
    %98 = vector.broadcast %cst_41 : f32 to vector<16x1xf32>
    %99 = arith.divf %97, %98 : vector<16x1xf32>
    %100 = vector.broadcast %92 : vector<16x1xf32> to vector<16x32xf32>
    %101 = arith.subf %86, %100 : vector<16x32xf32>
    %cst_42 = arith.constant 9.99999974E-6 : f32
    %102 = vector.broadcast %cst_42 : f32 to vector<16x1xf32>
    %103 = arith.addf %99, %102 : vector<16x1xf32>
    %104 = math.rsqrt %103 : vector<16x1xf32>
    %105 = vector.broadcast %104 : vector<16x1xf32> to vector<16x32xf32>
    %106 = arith.mulf %101, %105 : vector<16x32xf32>
    %107 = vector.broadcast %87 : vector<1x32xf32> to vector<16x32xf32>
    %108 = arith.mulf %106, %107 : vector<16x32xf32>
    %109 = vector.broadcast %88 : vector<1x32xf32> to vector<16x32xf32>
    %110 = arith.addf %108, %109 : vector<16x32xf32>
    %111 = arith.truncf %110 : vector<16x32xf32> to vector<16x32xbf16>
    %c0_43 = arith.constant 0 : index
    %c4 = arith.constant 4 : index
    %c0_44 = arith.constant 0 : index
    %c0_45 = arith.constant 0 : index
    %112 = vector.load %arg5[%c0_43, %c4, %c0_44, %c0_45] : memref<1x6x32x32xbf16, #tpu.memory_space<vmem>>, vector<1x1x32x32xbf16>
    %113 = vector.shape_cast %112 : vector<1x1x32x32xbf16> to vector<32x32xbf16>
    %cst_46 = arith.constant dense<0.000000e+00> : vector<16x32xf32>
    %114 = tpu.matmul %111, %113, %cst_46 {dimension_numbers = #tpu.dot_dimension_numbers<[1], [0], [0], [1], [0, 0, 1, 1], [], []>} : vector<16x32xbf16>, vector<32x32xbf16>, vector<16x32xf32> -> vector<16x32xf32>
    %115 = vector.extract_strided_slice %7 {offsets = [4, 0], sizes = [1, 32], strides = [1, 1]} : vector<10x32xf32> to vector<1x32xf32>
    %116 = vector.broadcast %115 : vector<1x32xf32> to vector<16x32xf32>
    %117 = arith.addf %114, %116 : vector<16x32xf32>
    %cst_47 = arith.constant 0.000000e+00 : f32
    %118 = vector.broadcast %cst_47 : f32 to vector<16x32xf32>
    %119 = arith.maximumf %117, %118 : vector<16x32xf32>
    %120 = arith.truncf %119 : vector<16x32xf32> to vector<16x32xbf16>
    %c0_48 = arith.constant 0 : index
    %c5 = arith.constant 5 : index
    %c0_49 = arith.constant 0 : index
    %c0_50 = arith.constant 0 : index
    %121 = vector.load %arg5[%c0_48, %c5, %c0_49, %c0_50] : memref<1x6x32x32xbf16, #tpu.memory_space<vmem>>, vector<1x1x32x32xbf16>
    %122 = vector.shape_cast %121 : vector<1x1x32x32xbf16> to vector<32x32xbf16>
    %cst_51 = arith.constant dense<0.000000e+00> : vector<16x32xf32>
    %123 = tpu.matmul %120, %122, %cst_51 {dimension_numbers = #tpu.dot_dimension_numbers<[1], [0], [0], [1], [0, 0, 1, 1], [], []>} : vector<16x32xbf16>, vector<32x32xbf16>, vector<16x32xf32> -> vector<16x32xf32>
    %124 = vector.extract_strided_slice %7 {offsets = [5, 0], sizes = [1, 32], strides = [1, 1]} : vector<10x32xf32> to vector<1x32xf32>
    %125 = vector.broadcast %124 : vector<1x32xf32> to vector<16x32xf32>
    %126 = arith.addf %123, %125 : vector<16x32xf32>
    %127 = arith.addf %110, %126 : vector<16x32xf32>
    %128 = vector.extract_strided_slice %7 {offsets = [8, 0], sizes = [1, 32], strides = [1, 1]} : vector<10x32xf32> to vector<1x32xf32>
    %129 = vector.extract_strided_slice %7 {offsets = [9, 0], sizes = [1, 32], strides = [1, 1]} : vector<10x32xf32> to vector<1x32xf32>
    %cst_52 = arith.constant dense<0.000000e+00> : vector<16xf32>
    %130 = vector.multi_reduction <add>, %127, %cst_52 [1] : vector<16x32xf32> to vector<16xf32>
    %131 = vector.shape_cast %130 : vector<16xf32> to vector<16x1xf32>
    %cst_53 = arith.constant 3.200000e+01 : f32
    %132 = vector.broadcast %cst_53 : f32 to vector<16x1xf32>
    %133 = arith.divf %131, %132 : vector<16x1xf32>
    %134 = vector.broadcast %133 : vector<16x1xf32> to vector<16x32xf32>
    %135 = arith.subf %127, %134 : vector<16x32xf32>
    %136 = arith.mulf %135, %135 : vector<16x32xf32>
    %cst_54 = arith.constant dense<0.000000e+00> : vector<16xf32>
    %137 = vector.multi_reduction <add>, %136, %cst_54 [1] : vector<16x32xf32> to vector<16xf32>
    %138 = vector.shape_cast %137 : vector<16xf32> to vector<16x1xf32>
    %cst_55 = arith.constant 3.200000e+01 : f32
    %139 = vector.broadcast %cst_55 : f32 to vector<16x1xf32>
    %140 = arith.divf %138, %139 : vector<16x1xf32>
    %141 = vector.broadcast %133 : vector<16x1xf32> to vector<16x32xf32>
    %142 = arith.subf %127, %141 : vector<16x32xf32>
    %cst_56 = arith.constant 9.99999974E-6 : f32
    %143 = vector.broadcast %cst_56 : f32 to vector<16x1xf32>
    %144 = arith.addf %140, %143 : vector<16x1xf32>
    %145 = math.rsqrt %144 : vector<16x1xf32>
    %146 = vector.broadcast %145 : vector<16x1xf32> to vector<16x32xf32>
    %147 = arith.mulf %142, %146 : vector<16x32xf32>
    %148 = vector.broadcast %128 : vector<1x32xf32> to vector<16x32xf32>
    %149 = arith.mulf %147, %148 : vector<16x32xf32>
    %150 = vector.broadcast %129 : vector<1x32xf32> to vector<16x32xf32>
    %151 = arith.addf %149, %150 : vector<16x32xf32>
    %152 = vector.broadcast %0 : vector<16x1xf32> to vector<16x32xf32>
    %153 = arith.mulf %151, %152 : vector<16x32xf32>
    %c0_57 = arith.constant 0 : index
    %c0_58 = arith.constant 0 : index
    %154 = vector.load %arg8[%c0_57, %c0_58] : memref<16x32xf32, #tpu.memory_space<vmem>>, vector<16x32xf32>
    tpu.vector_store %arg8[%c0_57, %c0_58], %153 {strides = array<i32>} : memref<16x32xf32, #tpu.memory_space<vmem>>, vector<16x32xf32>,
    %c1_i32 = arith.constant 1 : i32
    %155 = arith.cmpi eq, %arg1, %c1_i32 : i32
    %156 = arith.extui %155 : i1 to i32
    %c0_i32_59 = arith.constant 0 : i32
    %157 = arith.cmpi ne, %156, %c0_i32_59 : i32
    scf.if %157 {
      %c0_60 = arith.constant 0 : index
      %c1_61 = arith.constant 1 : index
      %158 = vector.load %arg2[%c0_60, %c1_61] : memref<16x2xf32, #tpu.memory_space<vmem>>, vector<16x1xf32>
      %c0_62 = arith.constant 0 : index
      %c0_63 = arith.constant 0 : index
      %159 = vector.load %arg8[%c0_62, %c0_63] : memref<16x32xf32, #tpu.memory_space<vmem>>, vector<16x32xf32>
      %160 = vector.broadcast %158 : vector<16x1xf32> to vector<16x32xf32>
      %161 = arith.mulf %159, %160 : vector<16x32xf32>
      %162 = vector.shape_cast %161 : vector<16x32xf32> to vector<2x8x32xf32>
      %cst_64 = arith.constant dense<0.000000e+00> : vector<2x32xf32>
      %163 = vector.multi_reduction <add>, %162, %cst_64 [1] : vector<2x8x32xf32> to vector<2x32xf32>
      %c0_65 = arith.constant 0 : index
      %c0_66 = arith.constant 0 : index
      %164 = vector.load %arg7[%c0_65, %c0_66] : memref<2x32xf32, #tpu.memory_space<vmem>>, vector<2x32xf32>
      tpu.vector_store %arg7[%c0_65, %c0_66], %163 {strides = array<i32>} : memref<2x32xf32, #tpu.memory_space<vmem>>, vector<2x32xf32>,
    } else {
    }
    return
  }
  func.func @transform_0(%arg0: i32, %arg1: i32) -> (i32, i32) {
    %c0_i32 = arith.constant 0 : i32
    %c0_i32_0 = arith.constant 0 : i32
    return %arg0, %c0_i32 : i32, i32
  }
  func.func @transform_1(%arg0: i32, %arg1: i32) -> (i32, i32) {
    %c0_i32 = arith.constant 0 : i32
    %c0_i32_0 = arith.constant 0 : i32
    return %arg0, %c0_i32 : i32, i32
  }
  func.func @transform_2(%arg0: i32, %arg1: i32) -> (i32, i32) {
    %c0_i32 = arith.constant 0 : i32
    %c0_i32_0 = arith.constant 0 : i32
    %c0_i32_1 = arith.constant 0 : i32
    return %c0_i32, %c0_i32_0 : i32, i32
  }
  func.func @transform_3(%arg0: i32, %arg1: i32) -> (i32, i32, i32, i32) {
    %c0_i32 = arith.constant 0 : i32
    %c0_i32_0 = arith.constant 0 : i32
    %c0_i32_1 = arith.constant 0 : i32
    %c0_i32_2 = arith.constant 0 : i32
    return %arg1, %c0_i32, %c0_i32_0, %c0_i32_1 : i32, i32, i32, i32
  }
  func.func @transform_4(%arg0: i32, %arg1: i32) -> (i32, i32, i32) {
    %c0_i32 = arith.constant 0 : i32
    %c0_i32_0 = arith.constant 0 : i32
    %c0_i32_1 = arith.constant 0 : i32
    return %arg1, %c0_i32, %c0_i32_0 : i32, i32, i32
  }
  func.func @transform_5(%arg0: i32, %arg1: i32) -> (i32, i32) {
    %c0_i32 = arith.constant 0 : i32
    %c0_i32_0 = arith.constant 0 : i32
    return %arg0, %c0_i32 : i32, i32
  }
}

</mosaic_0001>

<bundles_post_ra>
// kernel: eq.14
= control target key start
LH: loop header
LB: loop body
LE: loop exit
PB: predicated region body
PF: predicated region fallthrough
CT: control target
= control target key end

     0   :  { %v15_v2 = vmov 0   ;;  %s40_s0 = inlined_call_operand.vmem [shape: s32[16,1], index: 0, kind: input, shape index: {}]   ;;  %s41_s1 = inlined_call_operand.vmem [shape: s32[16,1], index: 1, kind: input, shape index: {}]   ;;  %s42_s2 = inlined_call_operand.vmem [shape: pred[16,1], index: 2, kind: output, shape index: {}]  }
   0x1   :  { %v3_v0 = vld [vmem:[%s40_s0] sm:$0x1] }
   0x2   :  { %v4_v1 = vld [vmem:[%s41_s1] sm:$0x1] }
   0x3   :  { %vm7_vm0 = vcmp.eq.s32.totalorder %v3_v0, %v4_v1 }
   0x4   :  { %v8_v3 = vsel %vm7_vm0, 1, %v15_v2 }
   0x5   :  { %v10_v4 = vpack.c.b16 %v15_v2, %v8_v3 }
   0x7   :  { %v11_v5 = vpack.c.b8 %v15_v2, %v10_v4 }
   0x9   :  { %13 = vst [vmem:[%s42_s2] sm:$0x1] %v11_v5 }

// kernel: sasrec_forward.3
= control target key start
LH: loop header
LB: loop body
LE: loop exit
PB: predicated region body
PF: predicated region fallthrough
CT: control target
= control target key end

     0   :  { %8 = vsyncpa [#allocation3], 0  ;;  %s288_s0 = inlined_call_operand.hbm [shape: f32[2,32], index: 0, kind: input, shape index: {}]   ;;  %s289_s1 = inlined_call_operand.hbm [shape: bf16[32,128], index: 1, kind: input, shape index: {}]   ;;  %s290_s2 = inlined_call_operand.hbm [shape: f32[1,128], index: 2, kind: input, shape index: {}]   ;;  %s291_s3 = inlined_call_operand.vmem [shape: f32[2,128], index: 3, kind: output, shape index: {}]  }
   0x1   :  { %9 = vsyncpa [#allocation5], 0  ;;  %s222_s12 = smov [#allocation4]   ;;  %s152_s16 = scalar_lea.hbm %s289_s1, 256 }
   0x2   :  { %s25_s13 = sshll.u32 %s222_s12, 4  ;;  %p153_p0 = scmp.ne.s32.totalorder %s289_s1, %s152_s16  ;;  %s26_s13 = int_to_ptr.vmem [resolvable:$true] %s25_s13 }
   0x3   :  { %p156_p1 = scmp.lt.u32.totalorder %s152_s16, %s289_s1 }
   0x5   :  { %p158_p2 = pnand %p156_p1, %p153_p0 }
   0x7   :  { %161 = shalt.err (!%p158_p2)
}
   0x8   :  { %s162_s21 = scalar_lea.vmem %s26_s13, 256  ;;  %p167_p4 = scmp.lt.s32.totalorder %s26_s13, %s26_s13 }
   0x9   :  { %p163_p3 = scmp.ne.s32.totalorder %s26_s13, %s162_s21  ;;  %p168_p5 = scmp.lt.s32.totalorder %s162_s21, %s162_s21 }
   0xb   :  { %p169_p6 = por %p168_p5, %p167_p4 }
   0xd   :  { %p170_p7 = pnand %p169_p6, %p163_p3 }
   0xf   :  { %173 = shalt.err (!%p170_p7)
}
  0x10   :  { %s223_s22 = smov 64   ;;  %s224_s23 = smov 4  }
  0x11   :  { %31 = dma.hbm_to_vmem [thread:$0]  %s289_s1, 256, %s26_s13, [#allocation5], %s223_s22, %s223_s22, %s224_s23  }
  0x12   :  { %s225_s26 = smov [#allocation2]   ;;  %s226_s28 = smov [#allocation6]  }
  0x13   :  { %s16_s27 = sshll.u32 %s225_s26, 4  ;;  %s38_s29 = sshll.u32 %s226_s28, 4  ;;  %s17_s27 = int_to_ptr.vmem [resolvable:$true] %s16_s27  ;;  %s39_s29 = int_to_ptr.vmem [resolvable:$true] %s38_s29 }
  0x14   :  { %s174_s5 = scalar_lea.hbm %s288_s0, 32 }
  0x15   :  { %p175_p8 = scmp.ne.s32.totalorder %s288_s0, %s174_s5  ;;  %p178_p9 = scmp.lt.u32.totalorder %s174_s5, %s288_s0 }
  0x17   :  { %p180_p10 = pnand %p178_p9, %p175_p8 }
  0x19   :  { %183 = shalt.err (!%p180_p10)
}
  0x1a   :  { %s184_s1 = scalar_lea.vmem %s17_s27, 32  ;;  %p189_p12 = scmp.lt.s32.totalorder %s17_s27, %s17_s27 }
  0x1b   :  { %p185_p11 = scmp.ne.s32.totalorder %s17_s27, %s184_s1  ;;  %p190_p13 = scmp.lt.s32.totalorder %s184_s1, %s184_s1 }
  0x1d   :  { %p191_p0 = por %p190_p13, %p189_p12 }
  0x1f   :  { %p192_p1 = pnand %p191_p0, %p185_p11 }
  0x21   :  { %195 = shalt.err (!%p192_p1)
}
  0x22   :  { %19 = dma.hbm_to_vmem [thread:$0]  %s288_s0, 32, %s17_s27, [#allocation3]  }
  0x23   :  { %s196_s14 = scalar_lea.hbm %s290_s2, 16 }
  0x24   :  { %p197_p2 = scmp.ne.s32.totalorder %s290_s2, %s196_s14  ;;  %p200_p3 = scmp.lt.u32.totalorder %s196_s14, %s290_s2 }
  0x26   :  { %p202_p4 = pnand %p200_p3, %p197_p2 }
  0x28   :  { %205 = shalt.err (!%p202_p4)
}
  0x29   :  { %s206_s19 = scalar_lea.vmem %s39_s29, 16  ;;  %s210_s20 = scalar_lea.vmem %s39_s29, 32 }
  0x2a   :  { %p207_p5 = scmp.ne.s32.totalorder %s39_s29, %s206_s19  ;;  %p211_p6 = scmp.lt.s32.totalorder %s39_s29, %s39_s29 }
  0x2b   :  { %p212_p7 = scmp.lt.s32.totalorder %s210_s20, %s206_s19 }
  0x2d   :  { %p213_p8 = por %p212_p7, %p211_p6 }
  0x2f   :  { %p214_p9 = pnand %p213_p8, %p207_p5 }
  0x31   :  { %217 = shalt.err (!%p214_p9)
}
  0x32   :  { %41 = dma.hbm_to_vmem [thread:$0]  %s290_s2, 16, %s39_s29, [#allocation5]  }
  0x33   :  { %218 = dma.done.wait [#allocation3], 32  }
  0x34   :  { %219 = vsyncadd [#allocation3], 4294967264 }
  0x35   :  { %220 = dma.done.wait [#allocation5], 272  }
  0x36   :  { %221 = vsyncadd [#allocation5], 4294967024  ;;  %v227_v0 = vmov 0.0   ;;  %vm228_vm0 = vmmov 0   ;;  %v150_v1 = vld [vmem:[#allocation4] sm:$0xff]   ;;  %v151_v2 = vld [vmem:[#allocation4 + $0x8] sm:$0xff]  }
  0x37   :  { %135 = vmatprep.subr.bf16.mxu0 %v227_v0  ;;  %139 = vmatprep.mubr.msk.bf16.mxu0 %vm228_vm0, %v227_v0  ;;  %v52_v3 = vld [vmem:[#allocation2] sm:$0x3]  ;;  %vm77_vm1 = vcmask 261120   ;;  %v128_v5 = vld [vmem:[#allocation6] ss:$0 sm:$0xff] }
  0x38   :  { %136 = vmatpush3.bf16.msra.mxu0 %v150_v1  ;;  %v53_v4 = vpack.c.bf16 %v52_v3, %v52_v3 }
  0x39   :  { %137 = vmatprep.subr.bf16.mxu0 %v227_v0 }
  0x3c   :  { %138 = vmatpush3.bf16.msra.mxu0 %v151_v2 }
  0x3f   :  { %140 = vmatmul.mubr.msk.bf16.vlgmr.msra.gmra.mrb[0].mxu0 %vm77_vm1, %v53_v4 }
 0x112   :  { %v115_v6 = vpop.f32.mrb[0].mxu0 }
 0x113   :  { %v116_v7 = vadd.f32 %v128_v5, %v115_v6  ;;  %v141_v8 = vpop.f32.mrb[1].mxu0 }
 0x114   :  { %v118_v9 = vpop.f32.mrb[2].mxu0 }
 0x115   :  { %121 = vst [vmem:[%s291_s3] sm:$0x3] %v116_v7  ;;  %v142_v10 = vpop.f32.mrb[3].mxu0 }
 0x116   :  { %126 = vsyncpa [#allocation3], 1 }
 0x117   :  { %127 = vsyncpa [#allocation5], 1 }

// kernel: sasrec_forward.2
= control target key start
LH: loop header
LB: loop body
LE: loop exit
PB: predicated region body
PF: predicated region fallthrough
CT: control target
= control target key end

     0   :  { %s2562_s0 = inlined_call_operand.hbm [shape: f32[16,2], index: 0, kind: input, shape index: {}]   ;;  %s2563_s1 = inlined_call_operand.hbm [shape: f32[16,32], index: 1, kind: input, shape index: {}]   ;;  %s2564_s2 = inlined_call_operand.hbm [shape: f32[8,8], index: 2, kind: input, shape index: {}]   ;;  %s2565_s3 = inlined_call_operand.hbm [shape: bf16[2,6,32,32], index: 3, kind: input, shape index: {}]   ;;  %s2566_s4 = inlined_call_operand.hbm [shape: f32[2,10,32], index: 4, kind: input, shape index: {}]   ;;  %s2567_s5 = inlined_call_operand.hbm [shape: f32[2,32], index: 5, kind: output, shape index: {}]  }
   0x1   :  { %2582 = sst [smem:[#allocation21_spill]] %s2563_s1 }
   0x2   :  { %2583 = sst [smem:[#allocation22_spill]] %s2565_s3 }
   0x3   :  { %10 = vsyncpa [#allocation5], 0 }
   0x4   :  { %11 = vsyncpa [#allocation8], 0 }
   0x5   :  { %12 = vsyncpa [#allocation11], 0 }
   0x6   :  { %14 = vsyncpa [#allocation11 + $0x1], 0 }
   0x7   :  { %15 = vsyncpa [#allocation6], 0  ;;  %s2114_s18 = smov 0   ;;  %s2116_s19 = smov 0  }
   0x8   :  { %s2118_s20 = smov 0   ;;  %s2120_s21 = smov 0  }
   0x9   :  { %s2122_s22 = smov 0   ;;  %s2124_s23 = smov 0  }
   0xa LB: > { %2584 = sst [smem:[#allocation18_spill]] %s2053_s20  ;;  %s2143_s24 = sadd.s32 4294967295, %s2065_s23   ;;  %s2065_s23 = sphi %s2124_s23, %s21_s23   ;;  %s2061_s22 = sphi %s2122_s22, %s2612_s22   ;;  %s2057_s21 = sphi %s2120_s21, %s2611_s21   ;;  %s2053_s20 = sphi %s2118_s20, %s2607_s20   ;;  %s2049_s19 = sphi %s2116_s19, %s2610_s19   ;;  %s2045_s18 = sphi %s2114_s18, %s2609_s18  }
   0xb   : > { %p126_p0 = scmp.ne.s32.totalorder %s2049_s19, %s2045_s18  ;;  %p2568_p1 = scmp.eq.s32.totalorder %s2143_s24, 0 }
   0xc   : > { %p1484_p2 = scmp.ge.s32.totalorder %s2065_s23, 1  ;;  %p189_p3 = scmp.lt.s32.totalorder %s2065_s23, 3 }
   0xd   : > { %p2151_p4 = por %p2568_p1, %p126_p0  ;;  %s2067_s27 = smov [#allocation7]  }
   0xe   : > { %p2155_p5 = pnand %p1484_p2, %p189_p3  ;;  %s220_s28 = sshll.u32 %s2067_s27, 4  ;;  %s221_s28 = int_to_ptr.vmem [resolvable:$true] %s220_s28 }
   0xf   : > { %s2585_s25 = scalar_select %p2151_p4, 1, 0 }
  0x10   : > { %s2586_s26 = scalar_select %p2155_p5, 1, 0 }
  0x11   : > { %p1704_p6 = pneg %p2155_p5  ;;  %s30_s30 = sadd.s32 1, %s2061_s22 }
  0x12   : > { %s2588_s1 = sld [smem:[#allocation21_spill]] }
  0x13   : > { %p2163_p7 = pnand %p1704_p6, %p2568_p1 }
  0x15   : > { %s2587_s29 = scalar_select %p2163_p7, 1, 0 }
  0x16   : > { %p2176_p9 = pneg %p2163_p7 }
  0x18   : > { %s1833_s8 = scalar_lea.hbm %s2588_s1, 256 }
  0x19   : > { %p1834_p8 = scmp.ne.s32.totalorder %s2588_s1, %s1833_s8  ;;  %p1840_p12 = scmp.lt.u32.totalorder %s1833_s8, %s2588_s1 }
  0x1b   : > { %p1836_p10 = pnand %p2176_p9, %p1834_p8 }
  0x1d   : > { %p1837_p11 = pneg %p1836_p10 }
  0x1f   : > { %p1842_p13 = pnand %p1840_p12, %p1837_p11 }
  0x21   : > { %1845 = shalt.err (!%p1842_p13)
}
  0x22   : > { %s1846_s14 = scalar_lea.vmem %s221_s28, 256  ;;  %p1854_p6 = scmp.lt.s32.totalorder %s221_s28, %s221_s28 }
  0x23   : > { %p1847_p0 = scmp.ne.s32.totalorder %s221_s28, %s1846_s14  ;;  %p1855_p1 = scmp.lt.s32.totalorder %s1846_s14, %s1846_s14 }
  0x25   : > { %p1849_p2 = pnand %p1847_p0, %p2176_p9  ;;  %p1856_p4 = por %p1855_p1, %p1854_p6 }
  0x27   : > { %p1850_p3 = pneg %p1849_p2 }
  0x29   : > { %p1857_p5 = pnand %p1856_p4, %p1850_p3 }
  0x2b   : > { %1860 = shalt.err (!%p1857_p5)
}
  0x2c   : > { %s2571_s15 = smov 128   ;;  %s2573_s16 = smov 8  }
  0x2d   : > { %1710 = dma.hbm_to_vmem [thread:$0]  (!%p2163_p7), %s2588_s1, 256, %s221_s28, [#allocation8], %s2571_s15, %s2571_s15, %s2573_s16  }
  0x2e   : > { %p31_p1 = scmp.ge.s32.totalorder %s30_s30, 2  ;;  %s113_s27 = sadd.s32 1, %s2053_s20 }
  0x2f   : > { %p120_p4 = scmp.ne.s32.totalorder %s2053_s20, %s2049_s19  ;;  %p121_p5 = scmp.eq.s32.totalorder %s2065_s23, 0 }
  0x30   : > { %s2614_s30 = smov (%p31_p1, %s30_s30), 0  ;;  %p1724_p10 = scmp.lt.s32.totalorder %s2065_s23, 2 }
  0x31   : > { %2590 = sst [smem:[#allocation19_spill]] %s2614_s30  ;;  %p122_p8 = por %p121_p5, %p120_p4 }
  0x32   : > { %s110_s6 = ssub.s32 %s2061_s22, %s2614_s30  ;;  %s245_s7 = sand.u32 1, %s2065_s23  }
  0x33   : > { %p111_p11 = scmp.eq.s32.totalorder %s110_s6, 0  ;;  %s247_s8 = sand.u32 1, %s2053_s20  }
  0x34   : > { %s1682_s9 = smul.u32 1536, %s2061_s22  ;;  %s2592_s3 = sld [smem:[#allocation22_spill]] }
  0x35   : > { %s2208_s10 = scalar_select %p111_p11, %s2053_s20, %s113_s27  }
  0x36   : > { %s1681_s12 = smul.u32 96, %s247_s8  ;;  %p2215_p12 = pnand %p1724_p10, %p122_p8 }
  0x37   : > { %2591 = sst [smem:[#allocation20_spill]] %s2208_s10  ;;  %s2221_s27 = sshll.u32 %s247_s8, 4 }
  0x38   : > { %s2593_s17 = scalar_select %p2215_p12, 1, 0 }
  0x39   : > { %s249_s18 = scalar_lea.vmem [#allocation10], %s1681_s12  ;;  %s2223_s15 = scalar_lea.sflag [#allocation11], %s245_s7 }
  0x3a   : > { %s2213_s28 = scalar_lea.hbm %s2592_s3, %s1682_s9  ;;  %s256_s6 = sshll.u32 %s249_s18, 4  ;;  %s2219_s6 = int_to_ptr.vmem [resolvable:$true] %s256_s6 }
  0x3b   : > { %s1861_s9 = scalar_lea.hbm %s2213_s28, 1536  ;;  %p2579_p0 = pneg %p2215_p12 }
  0x3c   : > { %p1862_p13 = scmp.ne.s32.totalorder %s2213_s28, %s1861_s9  ;;  %s1866_s16 = scalar_lea.hbm %s2592_s3, 3072 }
  0x3d   : > { %p1867_p6 = scmp.lt.u32.totalorder %s2213_s28, %s2592_s3  ;;  %p1868_p1 = scmp.lt.u32.totalorder %s1866_s16, %s1861_s9 }
  0x3e   : > { %p1864_p2 = pnand %p2579_p0, %p1862_p13  ;;  %p1870_p5 = scmp.lt.u32.totalorder %s1861_s9, %s2213_s28 }
  0x3f   : > { %p1869_p4 = por %p1868_p1, %p1867_p6 }
  0x40   : > { %p1865_p3 = pneg %p1864_p2 }
  0x41   : > { %p1871_p8 = por %p1870_p5, %p1869_p4 }
  0x43   : > { %p1872_p10 = pnand %p1871_p8, %p1865_p3 }
  0x45   : > { %1875 = shalt.err (!%p1872_p10)
}
  0x46   : > { %s1876_s7 = scalar_lea.vmem %s2219_s6, 1536  ;;  %s2070_s8 = smov [#allocation10]  }
  0x47   : > { %p1877_p11 = scmp.ne.s32.totalorder %s2219_s6, %s1876_s7  ;;  %s1881_s13 = sshll.u32 %s2070_s8, 4  ;;  %s1882_s13 = int_to_ptr.vmem [resolvable:$false] %s1881_s13 }
  0x48   : > { %s1883_s14 = scalar_lea.vmem %s1882_s13, 3072  ;;  %p1884_p7 = scmp.lt.s32.totalorder %s2219_s6, %s1882_s13 }
  0x49   : > { %p1879_p13 = pnand %p1877_p11, %p2579_p0  ;;  %p1885_p6 = scmp.lt.s32.totalorder %s1883_s14, %s1876_s7 }
  0x4b   : > { %p1880_p2 = pneg %p1879_p13  ;;  %p1886_p1 = por %p1885_p6, %p1884_p7 }
  0x4d   : > { %p1887_p4 = pnand %p1886_p1, %p1880_p2 }
  0x4f   : > { %1890 = shalt.err (!%p1887_p4)
}
  0x50   : > { %s2071_s16 = smov 64   ;;  %s2072_s9 = smov 4  }
  0x51   : > { %1717 = dma.hbm_to_vmem [thread:$0]  (!%p2215_p12), %s2213_s28, 1536, %s2219_s6, %s2223_s15, %s2071_s16, %s2071_s16, %s2072_s9  }
  0x52   : > { %s2073_s12 = smov [#allocation4]   ;;  %s2074_s8 = smov [#allocation9]  }
  0x53   : > { %s204_s18 = sshll.u32 %s2073_s12, 4  ;;  %s234_s1 = sshll.u32 %s2074_s8, 4  ;;  %s205_s18 = int_to_ptr.vmem [resolvable:$true] %s204_s18  ;;  %s235_s1 = int_to_ptr.vmem [resolvable:$true] %s234_s1 }
  0x54   : > { %s1891_s7 = scalar_lea.hbm %s2562_s0, 256 }
  0x55   : > { %p1892_p7 = scmp.ne.s32.totalorder %s2562_s0, %s1891_s7  ;;  %p1898_p8 = scmp.lt.u32.totalorder %s1891_s7, %s2562_s0 }
  0x57   : > { %p1894_p3 = pnand %p1892_p7, %p2176_p9 }
  0x59   : > { %p1895_p5 = pneg %p1894_p3 }
  0x5b   : > { %p1900_p10 = pnand %p1898_p8, %p1895_p5 }
  0x5d   : > { %1903 = shalt.err (!%p1900_p10)
}
  0x5e   : > { %s1904_s28 = scalar_lea.vmem %s205_s18, 256  ;;  %p1912_p6 = scmp.lt.s32.totalorder %s205_s18, %s205_s18 }
  0x5f   : > { %p1905_p11 = scmp.ne.s32.totalorder %s205_s18, %s1904_s28  ;;  %p1913_p1 = scmp.lt.s32.totalorder %s1904_s28, %s1904_s28 }
  0x61   : > { %p1907_p13 = pnand %p1905_p11, %p2176_p9  ;;  %p1914_p4 = por %p1913_p1, %p1912_p6 }
  0x63   : > { %p1908_p2 = pneg %p1907_p13 }
  0x65   : > { %p1915_p0 = pnand %p1914_p4, %p1908_p2 }
  0x67   : > { %1918 = shalt.err (!%p1915_p0)
}
  0x68   : > { %p2594_p7 = scmp.ne.s32.totalorder %s2587_s29, 0  ;;  %s2595_s3 = smov 8  }
  0x69   : > { %s2596_s30 = smov 128   ;;  %s1550_s6 = sshll.u32 %s2061_s22, 8 }
  0x6a   : > { %1707 = dma.hbm_to_vmem [thread:$0]  (!%p2594_p7), %s2562_s0, 256, %s205_s18, [#allocation5], %s2596_s30, %s2596_s30, %s2595_s3  }
  0x6b   : > { %s1919_s12 = scalar_lea.hbm %s2564_s2, 128 }
  0x6c   : > { %p1920_p0 = scmp.ne.s32.totalorder %s2564_s2, %s1919_s12  ;;  %p1926_p8 = scmp.lt.u32.totalorder %s1919_s12, %s2564_s2 }
  0x6e   : > { %p1922_p3 = pnand %p1920_p0, %p2176_p9 }
  0x70   : > { %p1923_p5 = pneg %p1922_p3 }
  0x72   : > { %p1928_p10 = pnand %p1926_p8, %p1923_p5 }
  0x74   : > { %1931 = shalt.err (!%p1928_p10)
}
  0x75   : > { %s1932_s18 = scalar_lea.vmem %s235_s1, 128  ;;  %p1940_p6 = scmp.lt.s32.totalorder %s235_s1, %s235_s1 }
  0x76   : > { %p1933_p11 = scmp.ne.s32.totalorder %s235_s1, %s1932_s18  ;;  %p1941_p1 = scmp.lt.s32.totalorder %s1932_s18, %s1932_s18 }
  0x78   : > { %p1935_p13 = pnand %p1933_p11, %p2176_p9  ;;  %p1942_p4 = por %p1941_p1, %p1940_p6 }
  0x7a   : > { %p1936_p2 = pneg %p1935_p13 }
  0x7c   : > { %p1943_p12 = pnand %p1942_p4, %p1936_p2 }
  0x7e   : > { %1946 = shalt.err (!%p1943_p12)
}
  0x7f   : > { %1713 = dma.hbm_to_vmem [thread:$0]  (!%p2594_p7), %s2564_s2, 128, %s235_s1, [#allocation8]  }
  0x80   : > { %s2294_s9 = scalar_lea.hbm %s2566_s4, %s1550_s6  ;;  %s270_s11 = scalar_lea.vmem [#allocation12], %s2221_s27 }
  0x81   : > { %s277_s12 = sshll.u32 %s270_s11, 4  ;;  %s1947_s29 = scalar_lea.hbm %s2294_s9, 256  ;;  %s2297_s12 = int_to_ptr.vmem [resolvable:$true] %s277_s12 }
  0x82   : > { %p1948_p9 = scmp.ne.s32.totalorder %s2294_s9, %s1947_s29  ;;  %p2597_p12 = scmp.ne.s32.totalorder %s2593_s17, 0 }
  0x83   : > { %s1952_s13 = scalar_lea.hbm %s2566_s4, 512  ;;  %p1953_p7 = scmp.lt.u32.totalorder %s2294_s9, %s2566_s4 }
  0x84   : > { %p2598_p0 = pneg %p2597_p12  ;;  %p1954_p8 = scmp.lt.u32.totalorder %s1952_s13, %s1947_s29 }
  0x85   : > { %p1956_p11 = scmp.lt.u32.totalorder %s1947_s29, %s2294_s9 }
  0x86   : > { %p1950_p3 = pnand %p1948_p9, %p2598_p0  ;;  %p1955_p10 = por %p1954_p8, %p1953_p7 }
  0x88   : > { %p1951_p5 = pneg %p1950_p3  ;;  %p1957_p13 = por %p1956_p11, %p1955_p10 }
  0x8a   : > { %p1958_p2 = pnand %p1957_p13, %p1951_p5 }
  0x8c   : > { %1961 = shalt.err (!%p1958_p2)
}
  0x8d   : > { %s1962_s27 = scalar_lea.vmem %s2297_s12, 256  ;;  %p2599_p1 = pmov %p2598_p0 }
  0x8e   : > { %p1963_p6 = scmp.ne.s32.totalorder %s2297_s12, %s1962_s27  ;;  %s2075_s14 = smov [#allocation12]  }
  0x8f   : > { %s1967_s18 = sshll.u32 %s2075_s14, 4  ;;  %s1968_s18 = int_to_ptr.vmem [resolvable:$false] %s1967_s18 }
  0x90   : > { %p1965_p4 = pnand %p1963_p6, %p2599_p1  ;;  %s1969_s28 = scalar_lea.vmem %s1968_s18, 512 }
  0x91   : > { %p1970_p0 = scmp.lt.s32.totalorder %s2297_s12, %s1968_s18  ;;  %p1971_p3 = scmp.lt.s32.totalorder %s1969_s28, %s1962_s27 }
  0x92   : > { %p1966_p9 = pneg %p1965_p4 }
  0x93   : > { %p1972_p7 = por %p1971_p3, %p1970_p0 }
  0x95   : > { %p1973_p8 = pnand %p1972_p7, %p1966_p9 }
  0x97   : > { %1976 = shalt.err (!%p1973_p8)
}
  0x98   : > { %1720 = dma.hbm_to_vmem [thread:$0]  (!%p2597_p12), %s2294_s9, 256, %s2297_s12, %s2223_s15, %s2596_s30, %s2596_s30, %s2595_s3  }
  0x99   : > { %p2600_p5 = scmp.ne.s32.totalorder %s2586_s26, 0 }
  0x9a   : > { %p2601_p10 = scmp.eq.s32.totalorder (!%p2600_p5), %s2143_s24, 0 }
  0x9b   : > { %289 = sbr.rel (%p2600_p5) target bundleno = 3289 (0xcd9), region = 40 }
  0xa2   : > { %2028 = dma.done.wait (%p2601_p10), [#allocation5], 256   ;;  %p2602_p11 = pmov %p2601_p10 }
  0xa3   : > { %p2603_p13 = pmov %p2601_p10 }
  0xa4   : > { %2030 = vsyncadd (%p2602_p11), [#allocation5], 4294967040 }
  0xa5   : > { %2032 = dma.done.wait (%p2603_p13), [#allocation8], 384   ;;  %p2604_p2 = pmov %p2601_p10 }
  0xa6   : > { %s303_s17 = sand.u32 1, %s2143_s24   ;;  %s305_s15 = sand.u32 1, %s2049_s19  }
  0xa7   : > { %2034 = vsyncadd (%p2604_p2), [#allocation8], 4294966912  ;;  %s1683_s3 = smul.u32 96, %s305_s15  ;;  %s304_s26 = scalar_lea.sflag [#allocation11], %s303_s17 }
  0xa8   : > { %p2605_p12 = scmp.ne.s32.totalorder %s2585_s25, 0 }
  0xa9   : > { %s2338_s30 = scalar_lea.vmem [#allocation10], %s1683_s3 }
  0xaa   : > { %2036 = dma.done.wait (%p2605_p12), %s304_s26, 1792  }
  0xab   : > { %2038 = vsyncadd (%p2605_p12), %s304_s26, 4294965504  ;;  %s2344_s20 = sshll.u32 %s305_s15, 4  ;;  %v2346_v0 = vld [vmem:[#allocation4] sm:$0xff]  ;;  %v2348_v1 = vld [vmem:[#allocation4 + $0x8] sm:$0xff]  ;;  %p1498_p6 = scmp.ne.s32.totalorder %s2057_s21, 0 }
  0xac   : > { %s316_s10 = scalar_lea.vmem [#allocation12], %s2344_s20  ;;  %v2076_v2 = vmov (!%p1498_p6), 0   ;;  %v352_v3 = vld [vmem:[#allocation7] sm:$0xff] (!%p1498_p6)  ;;  %vm366_vm0 = vcmask (!%p1498_p6), 261120   ;;  %v353_v6 = vld [vmem:[#allocation7 + $0x8] sm:$0xff] (!%p1498_p6) }
  0xad   : > { %351 = sbr.rel (%p1498_p6) target bundleno = 309 (0x135), region = 64  ;;  %1793 = vset.pattern.permute.xlu0 (!%p1498_p6), %v2076_v2 }
  0xae   : > { %356 = vperm.xlu0 (!%p1498_p6), %1793, %v2346_v0  }
  0xb2   : > { %361 = vperm.xlu0 (!%p1498_p6), %1793, %v2348_v1  }
 0x12d   : > { %v357_v4 = vpop.permute.xlu0 %356 }
 0x12e   : > { %v364_v5 = vmul.f32 %v357_v4, %v352_v3 }
 0x130   : > { %367 = vst.msk [vmem:[#allocation2] sm:$0xff] %vm366_vm0, %v364_v5 }
 0x131   : > { %v362_v7 = vpop.permute.xlu0 %361 }
 0x132   : > { %v365_v8 = vmul.f32 %v362_v7, %v353_v6 }
 0x134   : > { %368 = vst.msk [vmem:[#allocation2 + $0x8] sm:$0xff] %vm366_vm0, %v365_v8 }
 0x135 PF: > { %v1796_v9 = vld [vmem:[%s2338_s30 + $0x10] sm:$0xff]   ;;  %v2077_v10 = vmov 0.0   ;;  %v1797_v11 = vld [vmem:[%s2338_s30 + $0x18] sm:$0xff]   ;;  %v1798_v12 = vld [vmem:[%s2338_s30] sm:$0xff]   ;;  %vm2078_vm1 = vmmov 0   ;;  %vm395_vm2 = vcmask 261120   ;;  %v379_v19 = vlaneseq }
 0x136   : > { %1593 = vmatprep.subr.bf16.mxu1 %v2077_v10  ;;  %1585 = vmatprep.subr.bf16.mxu0 %v2077_v10  ;;  %v1799_v15 = vld [vmem:[%s2338_s30 + $0x8] sm:$0xff]   ;;  %v1800_v17 = vld [vmem:[%s2338_s30 + $0x20] sm:$0xff]   ;;  %vm570_vm3 = vcmask 130048   ;;  %s2079_s25 = smov 112   ;;  %vm691_vm4 = vcmask 1043456   ;;  %v2424_v56 = vld [vmem:[#allocation9] sm:$0xff] }
 0x137   : > { %1594 = vmatpush3.bf16.msra.mxu1 %v1796_v9  ;;  %1597 = vmatprep.mubr.msk.bf16.mxu1 %vm2078_vm1, %v2077_v10  ;;  %v2362_v13 = vld [vmem:[#allocation2] sm:$0xff]  ;;  %v1801_v18 = vld [vmem:[%s2338_s30 + $0x28] sm:$0xff]   ;;  %v2387_v20 = vshrl.u32 %v379_v19, 7  ;;  %v2392_v22 = vld [vmem:[%s316_s10] sm:$0xff]  ;;  %vm663_vm5 = vcmask 64512   ;;  %s2080_s16 = smov 16  }
 0x138   : > { %1595 = vmatprep.subr.bf16.mxu1 %v2077_v10  ;;  %1589 = vmatprep.mubr.msk.bf16.mxu0 %vm2078_vm1, %v2077_v10  ;;  %vm1017_vm6 = vcmask 261248   ;;  %p1545_p1 = scmp.ne.s32.totalorder %s2057_s21, 1 }
 0x139   : > { %1586 = vmatpush3.bf16.msra.mxu0 %v1798_v12  ;;  %v447_v21 = vsub.s32 1, %v2387_v20  ;;  %v381_v24 = vsub.s32 0, %v2387_v20  ;;  %v509_v35 = vsub.s32 2, %v2387_v20  ;;  %vm1353_vm7 = vcmask (!%p1545_p1), 1041409  }
 0x13a   : > { %1587 = vmatprep.subr.bf16.mxu0 %v2077_v10  ;;  %vm1356_vm8 = vcmask (!%p1545_p1), 254976  }
 0x13b   : > { %v2364_v14 = vld [vmem:[#allocation2 + $0x8] sm:$0xff]  ;;  %1596 = vmatpush3.bf16.msra.mxu1 %v1797_v11  ;;  %v448_v23 = vrot.slane %v2392_v22, %v447_v21  ;;  %v382_v28 = vrot.slane %v2392_v22, %v381_v24  ;;  %v510_v42 = vrot.slane %v2392_v22, %v509_v35 }
 0x13c   : > { %v371_v16 = vpack.c.bf16 %v2364_v14, %v2362_v13  ;;  %1609 = vmatprep.subr.bf16.mxu1 %v2077_v10 }
 0x13d   : > { %1588 = vmatpush3.bf16.msra.mxu0 %v1799_v15 }
 0x13e   : > { %1598 = vmatmul.mubr.msk.bf16.vlgmr.msra.gmra.mrb[0].mxu1 %vm395_vm2, %v371_v16  ;;  %1601 = vmatprep.subr.bf16.mxu0 %v2077_v10 }
 0x13f   : > { %1611 = vmatprep.mubr.msk.bf16.mxu1 %vm2078_vm1, %v2077_v10 }
 0x140   : > { %1590 = vmatmul.mubr.msk.bf16.vlgmr.msra.gmra.mrb[0].mxu0 %vm395_vm2, %v371_v16 }
 0x141   : > { %1602 = vmatpush3.bf16.msra.mxu0 %v1800_v17  ;;  %1605 = vmatprep.mubr.msk.bf16.mxu0 %vm2078_vm1, %v2077_v10 }
 0x142   : > { %1603 = vmatprep.subr.bf16.mxu0 %v2077_v10 }
 0x145   : > { %1604 = vmatpush3.bf16.msra.mxu0 %v1801_v18 }
 0x146   : > { %1615 = vmatprep.subr.bf16.mxu0 %v2077_v10 }
 0x148   : > { %1606 = vmatmul.mubr.msk.bf16.vlgmr.msra.gmra.mrb[4].mxu0 %vm395_vm2, %v371_v16 }
 0x149   : > { %1617 = vmatprep.mubr.msk.bf16.mxu0 %vm2078_vm1, %v2077_v10 }
 0x211   : > { %v495_v25 = vpop.f32.mrb[0].mxu1 }
 0x212   : > { %v496_v26 = vadd.f32 %v495_v25, %v448_v23  ;;  %v1599_v27 = vpop.f32.mrb[1].mxu1 }
 0x213   : > { %v498_v29 = vpop.f32.mrb[2].mxu1  ;;  %v433_v30 = vpop.f32.mrb[0].mxu0 }
 0x214   : > { %v566_v31 = vpack.c.bf16 %v496_v26, %v496_v26  ;;  %v499_v32 = vadd.f32 %v498_v29, %v448_v23  ;;  %v1600_v33 = vpop.f32.mrb[3].mxu1  ;;  %v1591_v34 = vpop.f32.mrb[1].mxu0  ;;  %v434_v39 = vadd.f32 %v433_v30, %v382_v28 }
 0x215   : > { %v436_v36 = vpop.f32.mrb[2].mxu0 }
 0x216   : > { %v575_v37 = vsel %vm570_vm3, %v566_v31, 0  ;;  %v567_v38 = vpack.c.bf16 %v499_v32, %v499_v32  ;;  %v1592_v40 = vpop.f32.mrb[3].mxu0  ;;  %v564_v43 = vpack.c.bf16 %v434_v39, %v434_v39  ;;  %v437_v44 = vadd.f32 %v436_v36, %v382_v28 }
 0x217   : > { %1610 = vmatpush3.bf16.xpose.msra.mxu1 %v575_v37 }
 0x218   : > { %v621_v41 = vsel %vm570_vm3, %v567_v38, 0  ;;  %839 = vrot.lane.b32.xlu1 %v567_v38, %s2079_s25  ;;  %1621 = vmatprep.subr.bf16.mxu1 %v2077_v10  ;;  %v565_v49 = vpack.c.bf16 %v437_v44, %v437_v44 }
 0x219   : > { %1616 = vmatpush3.bf16.xpose.msra.mxu0 %v621_v41 }
 0x21a   : > { %1627 = vmatprep.subr.bf16.mxu0 %v2077_v10 }
 0x21b   : > { %v557_v45 = vpop.f32.mrb[4].mxu0 }
 0x21c   : > { %v558_v46 = vadd.f32 %v557_v45, %v510_v42  ;;  %v1607_v47 = vpop.f32.mrb[5].mxu0 }
 0x21d   : > { %v560_v48 = vpop.f32.mrb[6].mxu0 }
 0x21e   : > { %1612 = vmatmul.mubr.msk.bf16.vlgmr.msra.gmra.mrb[4].mxu1 %vm570_vm3, %v564_v43  ;;  %v2409_v50 = vpack.c.bf16 %v558_v46, %v558_v46  ;;  %v561_v51 = vadd.f32 %v560_v48, %v510_v42  ;;  %v1608_v52 = vpop.f32.mrb[7].mxu0 }
 0x21f   : > { %1623 = vmatprep.mubr.msk.bf16.mxu1 %vm2078_vm1, %v2077_v10 }
 0x220   : > { %1618 = vmatmul.mubr.msk.bf16.vlgmr.msra.gmra.mrb[8].mxu0 %vm570_vm3, %v565_v49  ;;  %v693_v53 = vsel %vm691_vm4, %v2409_v50, 0  ;;  %v2416_v54 = vpack.c.bf16 %v561_v51, %v561_v51 }
 0x221   : > { %1622 = vmatpush3.bf16.msra.mxu1 %v693_v53  ;;  %1629 = vmatprep.mubr.msk.bf16.mxu0 %vm2078_vm1, %v2077_v10 }
 0x222   : > { %v739_v55 = vsel %vm691_vm4, %v2416_v54, 0  ;;  %1633 = vmatprep.subr.bf16.mxu1 %v2077_v10 }
 0x223   : > { %1628 = vmatpush3.bf16.msra.mxu0 %v739_v55 }
 0x224   : > { %1639 = vmatprep.subr.bf16.mxu0 %v2077_v10 }
 0x28a   : > { %v840_v23 = vpop.permute.xlu1 %839 }
 0x28b   : > { %v845_v35 = vsel %vm570_vm3, %v840_v23, 0 }
 0x2f1   : > { %v611_v57 = vpop.f32.mrb[4].mxu1 }
 0x2f2   : > { %v612_v58 = vadd.f32 %v611_v57, %v2424_v56  ;;  %v1613_v59 = vpop.f32.mrb[5].mxu1 }
 0x2f3   : > { %v614_v60 = vpop.f32.mrb[6].mxu1  ;;  %v657_v61 = vpop.f32.mrb[8].mxu0 }
 0x2f4   : > { %v658_v62 = vadd.f32 %v657_v61, %v2424_v56  ;;  %v1614_v63 = vpop.f32.mrb[7].mxu1  ;;  %v1619_v2 = vpop.f32.mrb[9].mxu0  ;;  %v664_v3 = vsel %vm663_vm5, %v612_v58, -inf }
 0x2f5   : > { %665 = vmax.xlane.f32.xlu0 %v664_v3  ;;  %v660_v4 = vpop.f32.mrb[10].mxu0 }
 0x2f6   : > { %v1620_v5 = vpop.f32.mrb[11].mxu0  ;;  %v667_v6 = vsel %vm663_vm5, %v658_v62, -inf }
 0x2f9   : > { %668 = vmax.xlane.f32.xlu0 %v667_v6 }
 0x30f   : > { %787 = vrot.lane.b32.xlu0 %v566_v31, %s2079_s25 }
 0x382   : > { %v666_v7 = vpop.xlane.xlu0 %665 }
 0x383   : > { %v670_v8 = vsub.f32 %v612_v58, %v666_v7 }
 0x385   : > { %v672_v9 = vmul.f32 1.442695, %v670_v8 }
 0x386   : > { %v669_v11 = vpop.xlane.xlu0 %668 }
 0x387   : > { %1808 = vpow2.f32 %v672_v9  ;;  %v671_v12 = vsub.f32 %v658_v62, %v669_v11 }
 0x389   : > { %v674_v15 = vmul.f32 1.442695, %v671_v12 }
 0x38a   : > { %v788_v29 = vpop.permute.xlu0 %787 }
 0x38b   : > { %1810 = vpow2.f32 %v674_v15  ;;  %v793_v32 = vsel %vm570_vm3, %v788_v29, 0 }
 0x391   : > { %v1809_v16 = vpop.eup %1808 }
 0x392   : > { %v676_v17 = vsel %vm663_vm5, %v1809_v16, 0.0 }
 0x393   : > { %677 = vadd.xlane.f32.xlu1 %v676_v17 }
 0x395   : > { %v1811_v18 = vpop.eup %1810 }
 0x396   : > { %v679_v19 = vsel %vm663_vm5, %v1811_v18, 0.0 }
 0x397   : > { %680 = vadd.xlane.f32.xlu1 %v679_v19 }
 0x3a8   : > { %784 = vrot.lane.b32.xlu1 %v564_v43, %s2079_s25 }
 0x3ac   : > { %836 = vrot.lane.b32.xlu1 %v565_v49, %s2079_s25 }
 0x420   : > { %v678_v25 = vpop.xlane.xlu1 %677 }
 0x421   : > { %1812 = vrcp.f32 %v678_v25  ;;  %v1802_v25 = vld [vmem:[%s2338_s30 + $0x30] sm:$0xff]  }
 0x424   : > { %v681_v26 = vpop.xlane.xlu1 %680 }
 0x425   : > { %1814 = vrcp.f32 %v681_v26  ;;  %v1803_v26 = vld [vmem:[%s2338_s30 + $0x38] sm:$0xff]  }
 0x428   : > { %v785_v36 = vpop.permute.xlu1 %784 }
 0x42b   : > { %v1813_v27 = vpop.eup %1812 }
 0x42c   : > { %v684_v28 = vmul.f32 %v1813_v27, %v1809_v16  ;;  %v837_v37 = vpop.permute.xlu1 %836 }
 0x42e   : > { %v686_v30 = vpack.c.bf16 %v684_v28, %v684_v28 }
 0x42f   : > { %v1815_v31 = vpop.eup %1814 }
 0x430   : > { %v685_v33 = vmul.f32 %v1815_v31, %v1811_v18  ;;  %1624 = vmatmul.mubr.msk.bf16.vlgmr.msra.gmra.mrb[8].mxu1 %vm663_vm5, %v686_v30 }
 0x431   : > { %1634 = vmatpush3.bf16.xpose.msra.mxu1 %v793_v32  ;;  %1635 = vmatprep.mubr.msk.bf16.mxu1 %vm2078_vm1, %v2077_v10 }
 0x432   : > { %v687_v34 = vpack.c.bf16 %v685_v33, %v685_v33  ;;  %1645 = vmatprep.subr.bf16.mxu1 %v2077_v10 }
 0x434   : > { %1630 = vmatmul.mubr.msk.bf16.vlgmr.msra.gmra.mrb[12].mxu0 %vm663_vm5, %v687_v34 }
 0x435   : > { %1640 = vmatpush3.bf16.xpose.msra.mxu0 %v845_v35  ;;  %1641 = vmatprep.mubr.msk.bf16.mxu0 %vm2078_vm1, %v2077_v10 }
 0x436   : > { %1651 = vmatprep.subr.bf16.mxu0 %v2077_v10 }
 0x438   : > { %1636 = vmatmul.mubr.msk.bf16.vlgmr.msra.gmra.mrb[12].mxu1 %vm570_vm3, %v785_v36 }
 0x439   : > { %1647 = vmatprep.mubr.msk.bf16.mxu1 %vm2078_vm1, %v2077_v10 }
 0x43c   : > { %1642 = vmatmul.mubr.msk.bf16.vlgmr.msra.gmra.mrb[16].mxu0 %vm570_vm3, %v837_v37 }
 0x43d   : > { %1653 = vmatprep.mubr.msk.bf16.mxu0 %vm2078_vm1, %v2077_v10 }
 0x503   : > { %v729_v38 = vpop.f32.mrb[8].mxu1 }
 0x504   : > { %781 = vst.msk [vmem:[#allocation3] sm:$0xff] %vm570_vm3, %v729_v38  ;;  %v1625_v39 = vpop.f32.mrb[9].mxu1 }
 0x505   : > { %v732_v40 = vpop.f32.mrb[10].mxu1 }
 0x506   : > { %v1626_v41 = vpop.f32.mrb[11].mxu1  ;;  %v1030_v40 = vsub.s32 3, %v2387_v20 }
 0x507   : > { %v775_v42 = vpop.f32.mrb[12].mxu0 }
 0x508   : > { %782 = vst.msk [vmem:[#allocation3 + $0x8] sm:$0xff] %vm570_vm3, %v775_v42  ;;  %v1631_v43 = vpop.f32.mrb[13].mxu0  ;;  %v1031_v41 = vrot.slane %v2392_v22, %v1030_v40 }
 0x509   : > { %v778_v44 = vpop.f32.mrb[14].mxu0 }
 0x50a   : > { %v1632_v45 = vpop.f32.mrb[15].mxu0 }
 0x50b   : > { %v829_v46 = vpop.f32.mrb[12].mxu1 }
 0x50c   : > { %v830_v47 = vadd.f32 %v829_v46, %v2424_v56  ;;  %v1637_v48 = vpop.f32.mrb[13].mxu1 }
 0x50d   : > { %v832_v49 = vpop.f32.mrb[14].mxu1 }
 0x50e   : > { %v1638_v51 = vpop.f32.mrb[15].mxu1  ;;  %v887_v52 = vsel %vm663_vm5, %v830_v47, -inf }
 0x50f   : > { %888 = vmax.xlane.f32.xlu0 %v887_v52  ;;  %v881_v53 = vpop.f32.mrb[16].mxu0 }
 0x510   : > { %v882_v55 = vadd.f32 %v881_v53, %v2424_v56  ;;  %v1643_v57 = vpop.f32.mrb[17].mxu0 }
 0x511   : > { %v884_v58 = vpop.f32.mrb[18].mxu0 }
 0x512   : > { %v1644_v59 = vpop.f32.mrb[19].mxu0  ;;  %v890_v60 = vsel %vm663_vm5, %v882_v55, -inf }
 0x513   : > { %891 = vmax.xlane.f32.xlu1 %v890_v60 }
 0x524   : > { %961 = vrot.lane.b32.xlu1 %v2416_v54, %s2079_s25 }
 0x59c   : > { %v889_v61 = vpop.xlane.xlu0 %888 }
 0x59d   : > { %v893_v62 = vsub.f32 %v830_v47, %v889_v61 }
 0x59f   : > { %v895_v63 = vmul.f32 1.442695, %v893_v62 }
 0x5a0   : > { %v892_v2 = vpop.xlane.xlu1 %891 }
 0x5a1   : > { %1816 = vpow2.f32 %v895_v63  ;;  %v894_v3 = vsub.f32 %v882_v55, %v892_v2  ;;  %v1805_v2 = vld [vmem:[%s2338_s30 + $0x48] sm:$0xff]  }
 0x5a3   : > { %v897_v4 = vmul.f32 1.442695, %v894_v3 }
 0x5a4   : > { %v962_v5 = vpop.permute.xlu1 %961 }
 0x5a5   : > { %1818 = vpow2.f32 %v897_v4  ;;  %v967_v56 = vsel %vm691_vm4, %v962_v5, 0 }
 0x5a6   : > { %1652 = vmatpush3.bf16.msra.mxu0 %v967_v56 }
 0x5a7   : > { %1665 = vmatprep.subr.bf16.mxu0 %v2077_v10 }
 0x5ab   : > { %v1817_v6 = vpop.eup %1816 }
 0x5ac   : > { %v899_v7 = vsel %vm663_vm5, %v1817_v6, 0.0 }
 0x5ad   : > { %900 = vadd.xlane.f32.xlu0 %v899_v7 }
 0x5af   : > { %v1819_v8 = vpop.eup %1818 }
 0x5b0   : > { %v902_v54 = vsel %vm663_vm5, %v1819_v8, 0.0 }
 0x5b1   : > { %903 = vadd.xlane.f32.xlu0 %v902_v54 }
 0x5c7   : > { %912 = vrot.lane.b32.xlu0 %v2409_v50, %s2079_s25 }
 0x63a   : > { %v901_v9 = vpop.xlane.xlu0 %900 }
 0x63b   : > { %1820 = vrcp.f32 %v901_v9 }
 0x63e   : > { %v904_v11 = vpop.xlane.xlu0 %903 }
 0x63f   : > { %1822 = vrcp.f32 %v904_v11 }
 0x642   : > { %v913_v12 = vpop.permute.xlu0 %912 }
 0x643   : > { %v918_v15 = vsel %vm691_vm4, %v913_v12, 0  ;;  %v1125_v12 = vsub.s32 7, %v2387_v20 }
 0x644   : > { %1646 = vmatpush3.bf16.msra.mxu1 %v918_v15 }
 0x645   : > { %v1821_v16 = vpop.eup %1820  ;;  %1657 = vmatprep.subr.bf16.mxu1 %v2077_v10 }
 0x646   : > { %v907_v17 = vmul.f32 %v1821_v16, %v1817_v6 }
 0x648   : > { %v909_v18 = vpack.c.bf16 %v907_v17, %v907_v17 }
 0x649   : > { %v1823_v19 = vpop.eup %1822 }
 0x64a   : > { %v908_v23 = vmul.f32 %v1823_v19, %v1819_v8  ;;  %1648 = vmatmul.mubr.msk.bf16.vlgmr.msra.gmra.mrb[16].mxu1 %vm663_vm5, %v909_v18  ;;  %v1119_v8 = vsub.s32 6, %v2387_v20  ;;  %v1126_v18 = vrot.slane %v2392_v22, %v1125_v12 }
 0x64b   : > { %1661 = vmatprep.mubr.msk.bf16.mxu1 %vm2078_vm1, %v2077_v10  ;;  %1658 = vmatpush3.bf16.msra.mxu1 %v1802_v25 }
 0x64c   : > { %v910_v50 = vpack.c.bf16 %v908_v23, %v908_v23  ;;  %1659 = vmatprep.subr.bf16.mxu1 %v2077_v10  ;;  %v1120_v9 = vrot.slane %v2392_v22, %v1119_v8 }
 0x64e   : > { %1654 = vmatmul.mubr.msk.bf16.vlgmr.msra.gmra.mrb[20].mxu0 %vm663_vm5, %v910_v50 }
 0x64f   : > { %1669 = vmatprep.mubr.msk.bf16.mxu0 %vm2078_vm1, %v2077_v10  ;;  %1660 = vmatpush3.bf16.msra.mxu1 %v1803_v26  ;;  %v1806_v26 = vld [vmem:[%s2338_s30 + $0x50] sm:$0xff]  }
 0x650   : > { %1673 = vmatprep.subr.bf16.mxu1 %v2077_v10 }
 0x71d   : > { %v954_v27 = vpop.f32.mrb[16].mxu1 }
 0x71e   : > { %1011 = vrot.lane.b32.xlu1 %v954_v27, %s2080_s16  ;;  %v1649_v28 = vpop.f32.mrb[17].mxu1  ;;  %v1807_v27 = vld [vmem:[%s2338_s30 + $0x58] sm:$0xff]  }
 0x71f   : > { %v957_v29 = vpop.f32.mrb[18].mxu1  ;;  %v1137_v28 = vsub.s32 4, %v2387_v20 }
 0x720   : > { %v1650_v30 = vpop.f32.mrb[19].mxu1 }
 0x721   : > { %v1003_v31 = vpop.f32.mrb[20].mxu0  ;;  %v1138_v29 = vrot.slane %v2392_v22, %v1137_v28 }
 0x722   : > { %1013 = vrot.lane.b32.xlu1 %v1003_v31, %s2080_s16  ;;  %v1655_v32 = vpop.f32.mrb[21].mxu0 }
 0x723   : > { %v1006_v33 = vpop.f32.mrb[22].mxu0 }
 0x724   : > { %v1656_v34 = vpop.f32.mrb[23].mxu0 }
 0x790   : > { %v1012_v35 = vpop.permute.xlu1 %1011 }
 0x791   : > { %1018 = vst.msk [vmem:[#allocation3] sm:$0xff] %vm1017_vm6, %v1012_v35 }
 0x794   : > { %v1014_v36 = vpop.permute.xlu1 %1013 }
 0x795   : > { %1019 = vst.msk [vmem:[#allocation3 + $0x8] sm:$0xff] %vm1017_vm6, %v1014_v36 }
 0x798   : > { %v1020_v37 = vld [vmem:[#allocation3] sm:$0xff] }
 0x79c   : > { %v1021_v38 = vld [vmem:[#allocation3 + $0x8] sm:$0xff] }
 0x79d   : > { %v1022_v39 = vpack.c.bf16 %v1021_v38, %v1020_v37 }
 0x79f   : > { %1662 = vmatmul.mubr.msk.bf16.vlgmr.msra.gmra.mrb[20].mxu1 %vm395_vm2, %v1022_v39  ;;  %v1205_v39 = vsub.s32 5, %v2387_v20  ;;  %v2082_v20 = vmov (!%p1545_p1), 1  }
 0x7a0   : > { %1677 = vmatprep.mubr.msk.bf16.mxu1 %vm2078_vm1, %v2077_v10  ;;  %1674 = vmatpush3.bf16.msra.mxu1 %v1806_v26 }
 0x7a1   : > { %1675 = vmatprep.subr.bf16.mxu1 %v2077_v10 }
 0x7a4   : > { %1676 = vmatpush3.bf16.msra.mxu1 %v1807_v27 }
 0x872   : > { %v1081_v42 = vpop.f32.mrb[20].mxu1 }
 0x873   : > { %v1082_v43 = vadd.f32 %v1081_v42, %v1031_v41  ;;  %v1663_v44 = vpop.f32.mrb[21].mxu1 }
 0x874   : > { %v1084_v45 = vpop.f32.mrb[22].mxu1 }
 0x875   : > { %v1085_v46 = vadd.f32 %v1084_v45, %v1031_v41  ;;  %v1664_v47 = vpop.f32.mrb[23].mxu1  ;;  %v1088_v48 = vadd.f32 %v1082_v43, %v2362_v13 }
 0x877   : > { %v1090_v49 = vsel %vm395_vm2, %v1088_v48, 0.0  ;;  %v1089_v51 = vadd.f32 %v1085_v46, %v2364_v14  ;;  %v1804_v14 = vld [vmem:[%s2338_s30 + $0x40] sm:$0xff]  }
 0x878   : > { %1091 = vadd.xlane.f32.xlu0 %v1090_v49  ;;  %1666 = vmatpush3.bf16.msra.mxu0 %v1804_v14 }
 0x879   : > { %v1093_v52 = vsel %vm395_vm2, %v1089_v51, 0.0  ;;  %1667 = vmatprep.subr.bf16.mxu0 %v2077_v10  ;;  %v1206_v10 = vrot.slane %v2392_v22, %v1205_v39 }
 0x87a   : > { %1094 = vadd.xlane.f32.xlu1 %v1093_v52 }
 0x87c   : > { %1668 = vmatpush3.bf16.msra.mxu0 %v1805_v2 }
 0x905   : > { %v1092_v53 = vpop.xlane.xlu0 %1091 }
 0x906   : > { %v1097_v55 = vmul.f32 0.03125, %v1092_v53 }
 0x907   : > { %v1095_v57 = vpop.xlane.xlu1 %1094 }
 0x908   : > { %v1099_v58 = vsub.f32 %v1088_v48, %v1097_v55  ;;  %v1098_v59 = vmul.f32 0.03125, %v1095_v57 }
 0x90a   : > { %v1100_v60 = vsub.f32 %v1089_v51, %v1098_v59  ;;  %v1101_v61 = vmul.f32 %v1099_v58, %v1099_v58  ;;  %v2081_v51 = vmov 0  }
 0x90b   : > { %1794 = vset.pattern.permute.xlu0 %v2081_v51  ;;  %1795 = vset.pattern.permute.xlu1 %v2081_v51 }
 0x90c   : > { %v1103_v62 = vsel %vm395_vm2, %v1101_v61, 0.0  ;;  %v1102_v13 = vmul.f32 %v1100_v60, %v1100_v60 }
 0x90d   : > { %1104 = vadd.xlane.f32.xlu0 %v1103_v62 }
 0x90e   : > { %v1106_v63 = vsel %vm395_vm2, %v1102_v13, 0.0 }
 0x911   : > { %1107 = vadd.xlane.f32.xlu0 %v1106_v63 }
 0x99a   : > { %v1105_v3 = vpop.xlane.xlu0 %1104 }
 0x99b   : > { %v1109_v4 = vmul.f32 0.03125, %v1105_v3 }
 0x99d   : > { %v1111_v5 = vadd.f32 1e-05, %v1109_v4 }
 0x99e   : > { %v1108_v56 = vpop.xlane.xlu0 %1107 }
 0x99f   : > { %1824 = vrsqrt.f32 %v1111_v5  ;;  %v1110_v6 = vmul.f32 0.03125, %v1108_v56  ;;  %v373_v5 = vld [vmem:[%s316_s10 + $0x8] sm:$0x3] }
 0x9a0   : > { %v1294_v56 = vrot.slane %v373_v5, %v381_v24  ;;  %v1321_v24 = vld [vmem:[#allocation4] sm:$0xff] (!%p1545_p1) }
 0x9a1   : > { %v1112_v7 = vadd.f32 1e-05, %v1110_v6 }
 0x9a3   : > { %1826 = vrsqrt.f32 %v1112_v7 }
 0x9a9   : > { %v1825_v54 = vpop.eup %1824 }
 0x9aa   : > { %v1115_v11 = vmul.f32 %v1825_v54, %v1099_v58 }
 0x9ac   : > { %v1121_v16 = vmul.f32 %v1120_v9, %v1115_v11 }
 0x9ad   : > { %v1827_v15 = vpop.eup %1826 }
 0x9ae   : > { %v1116_v17 = vmul.f32 %v1827_v15, %v1100_v60  ;;  %v1127_v23 = vadd.f32 %v1126_v18, %v1121_v16 }
 0x9b0   : > { %v1122_v19 = vmul.f32 %v1120_v9, %v1116_v17 }
 0x9b2   : > { %v1128_v50 = vadd.f32 %v1126_v18, %v1122_v19 }
 0x9b4   : > { %v1129_v25 = vpack.c.bf16 %v1128_v50, %v1127_v23 }
 0x9b6   : > { %1670 = vmatmul.mubr.msk.bf16.vlgmr.msra.gmra.mrb[24].mxu0 %vm395_vm2, %v1129_v25 }
 0xa89   : > { %v1188_v30 = vpop.f32.mrb[24].mxu0 }
 0xa8a   : > { %v1189_v31 = vadd.f32 %v1188_v30, %v1138_v29  ;;  %v1671_v32 = vpop.f32.mrb[25].mxu0 }
 0xa8b   : > { %v1191_v33 = vpop.f32.mrb[26].mxu0 }
 0xa8c   : > { %v1192_v34 = vadd.f32 %v1191_v33, %v1138_v29  ;;  %v1672_v35 = vpop.f32.mrb[27].mxu0  ;;  %v1195_v36 = vmax.f32 %v1189_v31, 0.0 }
 0xa8e   : > { %v1196_v37 = vmax.f32 %v1192_v34, 0.0 }
 0xa90   : > { %v1197_v38 = vpack.c.bf16 %v1196_v37, %v1195_v36 }
 0xa92   : > { %1678 = vmatmul.mubr.msk.bf16.vlgmr.msra.gmra.mrb[24].mxu1 %vm395_vm2, %v1197_v38 }
 0xb65   : > { %v1256_v40 = vpop.f32.mrb[24].mxu1 }
 0xb66   : > { %v1257_v41 = vadd.f32 %v1256_v40, %v1206_v10  ;;  %v1679_v42 = vpop.f32.mrb[25].mxu1 }
 0xb67   : > { %v1259_v43 = vpop.f32.mrb[26].mxu1 }
 0xb68   : > { %v1260_v44 = vadd.f32 %v1259_v43, %v1206_v10  ;;  %v1680_v45 = vpop.f32.mrb[27].mxu1  ;;  %v1263_v46 = vadd.f32 %v1257_v41, %v1127_v23 }
 0xb6a   : > { %v1265_v47 = vsel %vm395_vm2, %v1263_v46, 0.0  ;;  %v1264_v48 = vadd.f32 %v1260_v44, %v1128_v50 }
 0xb6b   : > { %1266 = vadd.xlane.f32.xlu0 %v1265_v47 }
 0xb6c   : > { %v1268_v49 = vsel %vm395_vm2, %v1264_v48, 0.0 }
 0xb6d   : > { %1269 = vadd.xlane.f32.xlu1 %v1268_v49 }
 0xbf8   : > { %v1267_v52 = vpop.xlane.xlu0 %1266 }
 0xbf9   : > { %v1271_v53 = vmul.f32 0.03125, %v1267_v52 }
 0xbfa   : > { %v1270_v22 = vpop.xlane.xlu1 %1269 }
 0xbfb   : > { %v1273_v55 = vsub.f32 %v1263_v46, %v1271_v53  ;;  %v1272_v57 = vmul.f32 0.03125, %v1270_v22 }
 0xbfd   : > { %v1274_v58 = vsub.f32 %v1264_v48, %v1272_v57  ;;  %v1275_v59 = vmul.f32 %v1273_v55, %v1273_v55 }
 0xbff   : > { %v1277_v60 = vsel %vm395_vm2, %v1275_v59, 0.0  ;;  %v1276_v61 = vmul.f32 %v1274_v58, %v1274_v58 }
 0xc00   : > { %1278 = vadd.xlane.f32.xlu0 %v1277_v60 }
 0xc01   : > { %v1280_v62 = vsel %vm395_vm2, %v1276_v61, 0.0 }
 0xc02   : > { %1281 = vadd.xlane.f32.xlu1 %v1280_v62 }
 0xc13   : > { %1310 = vperm.xlu1 %1795, %v2348_v1   ;;  %v1300_v1 = vrot.slane %v373_v5, %v447_v21  ;;  %v1322_v21 = vld [vmem:[#allocation4 + $0x8] sm:$0xff] (!%p1545_p1) }
 0xc16   : > { %1305 = vperm.xlu0 %1794, %v2346_v0  }
 0xc1a   : > { %1832 = vset.pattern.permute.xlu0 (!%p1545_p1), %v2082_v20 }
 0xc1b   : > { %1327 = vperm.xlu0 (!%p1545_p1), %1832, %v1321_v24  }
 0xc1f   : > { %1332 = vperm.xlu0 (!%p1545_p1), %1832, %v1322_v21  }
 0xc8d   : > { %v1279_v13 = vpop.xlane.xlu0 %1278 }
 0xc8e   : > { %v1283_v63 = vmul.f32 0.03125, %v1279_v13 }
 0xc8f   : > { %v1282_v14 = vpop.xlane.xlu1 %1281 }
 0xc90   : > { %v1285_v2 = vadd.f32 1e-05, %v1283_v63  ;;  %v1284_v3 = vmul.f32 0.03125, %v1282_v14 }
 0xc92   : > { %1828 = vrsqrt.f32 %v1285_v2  ;;  %v1286_v4 = vadd.f32 1e-05, %v1284_v3 }
 0xc93   : > { %v1311_v15 = vpop.permute.xlu1 %1310 }
 0xc94   : > { %1830 = vrsqrt.f32 %v1286_v4 }
 0xc95   : > { %v1306_v9 = vpop.permute.xlu0 %1305 }
 0xc9a   : > { %v1328_v23 = vpop.permute.xlu0 (!%p1545_p1), %1327 }
 0xc9c   : > { %v1829_v6 = vpop.eup %1828 }
 0xc9d   : > { %v1289_v7 = vmul.f32 %v1829_v6, %v1273_v55 }
 0xc9e   : > { %v1831_v8 = vpop.eup %1830  ;;  %v1333_v28 = vpop.permute.xlu0 (!%p1545_p1), %1332 }
 0xc9f   : > { %v1295_v0 = vmul.f32 %v1294_v56, %v1289_v7  ;;  %v1290_v54 = vmul.f32 %v1831_v8, %v1274_v58 }
 0xca1   : > { %v1301_v11 = vadd.f32 %v1300_v1, %v1295_v0  ;;  %v1296_v12 = vmul.f32 %v1294_v56, %v1290_v54  ;;  %1320 = sbr.rel (%p1545_p1) target bundleno = 3264 (0xcc0), region = 68 }
 0xca3   : > { %v1313_v16 = vmul.f32 %v1306_v9, %v1301_v11  ;;  %v1302_v17 = vadd.f32 %v1300_v1, %v1296_v12 }
 0xca5   : > { %1315 = vst.msk [vmem:[#allocation2] sm:$0xff] %vm395_vm2, %v1313_v16  ;;  %v1314_v18 = vmul.f32 %v1311_v15, %v1302_v17 }
 0xca7   : > { %1316 = vst.msk [vmem:[#allocation2 + $0x8] sm:$0xff] %vm395_vm2, %v1314_v18 }
 0xcac   : > { %v1323_v19 = vld [vmem:[#allocation2] sm:$0xff] }
 0xcad   : > { %v1335_v50 = vmul.f32 %v1328_v23, %v1323_v19 }
 0xcae   : > { %v1324_v25 = vld [vmem:[#allocation2 + $0x8] sm:$0xff] }
 0xcaf   : > { %v1337_v26 = vsel %vm395_vm2, %v1335_v50, 0.0  ;;  %v1336_v29 = vmul.f32 %v1333_v28, %v1324_v25 }
 0xcb0   : > { %v1338_v27 = vrot.slane %v1337_v26, 4 }
 0xcb1   : > { %v1344_v31 = vsel %vm395_vm2, %v1336_v29, 0.0 }
 0xcb2   : > { %v1339_v30 = vadd.f32 %v1338_v27, %v1337_v26  ;;  %v1345_v33 = vrot.slane %v1344_v31, 4 }
 0xcb4   : > { %v1340_v32 = vrot.slane %v1339_v30, 2  ;;  %v1346_v35 = vadd.f32 %v1345_v33, %v1344_v31 }
 0xcb6   : > { %v1341_v34 = vadd.f32 %v1340_v32, %v1339_v30  ;;  %v1347_v36 = vrot.slane %v1346_v35, 2 }
 0xcb8   : > { %v1342_v37 = vrot.slane %v1341_v34, 1  ;;  %v1348_v38 = vadd.f32 %v1347_v36, %v1346_v35 }
 0xcba   : > { %v1349_v39 = vrot.slane %v1348_v38, 1  ;;  %v1343_v10 = vadd.f32 %v1342_v37, %v1341_v34 }
 0xcbc   : > { %v1350_v40 = vadd.f32 %v1349_v39, %v1348_v38 }
 0xcbe   : > { %v1354_v41 = vsel %vm1353_vm7, %v1350_v40, %v1343_v10 }
 0xcbf   : > { %1357 = vst.msk [vmem:[#allocation13] sm:$0x3] %vm1356_vm8, %v1354_v41 }
 0xcc0 PF: > { %p1728_p4 = scmp.eq.s32.totalorder %s2143_s24, 1  ;;  %s2083_s21 = smov [#allocation13]  }
 0xcc1   : > { %s1367_s9 = sshll.u32 %s2083_s21, 4  ;;  %s1368_s9 = int_to_ptr.vmem [resolvable:$true] %s1367_s9 }
 0xcc2   : > { %s1977_s11 = scalar_lea.vmem %s1368_s9, 32  ;;  %p1984_p7 = scmp.lt.s32.totalorder %s1368_s9, %s1368_s9 }
 0xcc3   : > { %p1978_p9 = scmp.ne.s32.totalorder %s1368_s9, %s1977_s11  ;;  %p1985_p8 = scmp.lt.s32.totalorder %s1977_s11, %s1977_s11 }
 0xcc5   : > { %p1979_p0 = pnand %p1978_p9, %p1728_p4  ;;  %p1986_p5 = por %p1985_p8, %p1984_p7 }
 0xcc7   : > { %p1980_p3 = pneg %p1979_p0 }
 0xcc9   : > { %p1987_p10 = pnand %p1986_p5, %p1980_p3 }
 0xccb   : > { %1990 = shalt.err (!%p1987_p10)
}
 0xccc   : > { %s1991_s1 = scalar_lea.hbm %s2567_s5, 32 }
 0xccd   : > { %p1992_p11 = scmp.ne.s32.totalorder %s2567_s5, %s1991_s1  ;;  %p1997_p12 = scmp.lt.u32.totalorder %s1991_s1, %s2567_s5 }
 0xccf   : > { %p1993_p13 = pnand %p1992_p11, %p1728_p4 }
 0xcd1   : > { %p1994_p2 = pneg %p1993_p13 }
 0xcd3   : > { %p1999_p6 = pnand %p1997_p12, %p1994_p2 }
 0xcd5   : > { %2002 = shalt.err (!%p1999_p6)
}
 0xcd6   : > { %1701 = dma.vmem_to_hbm [thread:$0]  (%p1728_p4), %s1368_s9, 32, %s2567_s5, [#allocation6]  }
 0xcd7   : > { %2040 = dma.done.wait (%p1728_p4), [#allocation6], 32  }
 0xcd8   : > { %2042 = vsyncadd (%p1728_p4), [#allocation6], 4294967264 }
 0xcd9 PF: > { %s21_s23 = sadd.s32 1, %s2065_s23   ;;  %s2606_s28 = sld [smem:[#allocation18_spill]] }
 0xcda   : > { %p18_p1 = scmp.ge.s32.totalorder %s21_s23, 4   ;;  %s2607_s20 = sld [smem:[#allocation20_spill]] }
 0xcdb   : > { %s2608_s17 = sld [smem:[#allocation19_spill]]  ;;  %s2609_s18 = smov %s2049_s19 }
 0xcdc   : > { %s2611_s21 = smov %s2061_s22  ;;  %20 = sbr.rel (!%p18_p1) target bundleno = 10 (0xa), region = 117 }
 0xcdf   : > { %s2610_s19 = smov %s2606_s28 }
 0xce1   : > { %s2612_s22 = smov %s2608_s17 }
 0xce3   :  { %1380 = vsyncpa [#allocation5], 1 }
 0xce4   :  { %1382 = vsyncpa [#allocation5 + $0x1], 1 }
 0xce5   :  { %1383 = vsyncpa [#allocation8], 1 }
 0xce6   :  { %1384 = vsyncpa [#allocation11], 1 }
 0xce7   :  { %1386 = vsyncpa [#allocation11 + $0x1], 1 }
 0xce8   :  { %1387 = vsyncpa [#allocation6], 1 }
 0xce9   :  { %1389 = vsyncpa [#allocation6 + $0x1], 1 }

</bundles_post_ra>
